<compile_context>
chip_gen: v7x
topology: tpu7x:2x2x1
jax: 0.10.0
libtpu: 0.0.40
codegen_flags: <defaults>
</compile_context>

<pallas_src>
import functools
import math

import jax
import jax.numpy as jnp
import numpy as np
from jax import lax
from jax.experimental import pallas as pl
from jax.experimental.pallas import tpu as pltpu

LN_EPS = 1e-5  # torch.nn.LayerNorm default


def _decoder_kernel(z_ref, wqkv_ref, g1_ref, b1_ref, w1_ref, w2_ref,
                    g2_ref, b2_ref, o_ref, mask_ref, *,
                    num_heads, d_k, d_v, batch_tile, seq_len, mxu_dtype):
    """All decoder layers; grid = (batch_block, layer).

    o_ref's block index is constant along the layer axis, so it stays resident
    in VMEM and carries the activation across layers for this batch block.
    """
    H, S, Bt = num_heads, seq_len, batch_tile
    layer = pl.program_id(1)

    @pl.when(layer == 0)
    def _():
        # Seed the resident activation and build the causal mask once per
        # batch block (hoisted out of the per-layer body).
        o_ref[...] = z_ref[...]
        row = lax.broadcasted_iota(jnp.int32, (S, S), 0)
        col = lax.broadcasted_iota(jnp.int32, (S, S), 1)
        mask_ref[...] = (row >= col).astype(jnp.float32)

    x = o_ref[...].astype(jnp.float32)                        # (Bt*S, D)

    # ---- fused Q|K|V projection: one wide bf16 MXU matmul, f32 accumulate ----
    qkv = jnp.dot(x.astype(mxu_dtype), wqkv_ref[...],
                  preferred_element_type=jnp.float32)          # (Bt*S, n_qkv)
    qk_off = H * d_k
    v_off = 2 * H * d_k

    mask = mask_ref[...]                                       # (S, S) 1.0/0.0

    # ---- masked multi-head self-attention ----
    # Heads stay a short static loop (d_k is intrinsically tiny); each head does
    # one Bt-batched score and one Bt-batched context contraction with bf16
    # MXU operands. Head outputs are concatenated as values (lane-dense single
    # write of the block at the end; no masked sub-lane stores).
    # TODO(synk): flash-tile over KV blocks (online softmax) for realistic S.
    heads = []
    for h in range(H):                                         # static, H iters
        q_h = qkv[:, h * d_k:(h + 1) * d_k].reshape(Bt, S, d_k)
        k_h = qkv[:, qk_off + h * d_k:qk_off + (h + 1) * d_k].reshape(Bt, S, d_k)
        v_h = qkv[:, v_off + h * d_v:v_off + (h + 1) * d_v].reshape(Bt, S, d_v)
        s = jnp.einsum('bqd,bkd->bqk', q_h.astype(mxu_dtype),
                       k_h.astype(mxu_dtype),
                       preferred_element_type=jnp.float32)     # (Bt, S, S)
        # replicate torch quirk: tril() then masked_fill(score == 0, -inf)
        s = s * mask[None, :, :]
        s = jnp.where(s == 0.0, -jnp.inf, s)
        m = jnp.max(s, axis=-1, keepdims=True)                 # f32 stats
        e = jnp.exp(s - m)                                     # f32 exp (v5e-safe)
        p = e / jnp.sum(e, axis=-1, keepdims=True)
        ctx = jnp.einsum('bqk,bkd->bqd', p.astype(mxu_dtype),
                         v_h.astype(mxu_dtype),
                         preferred_element_type=jnp.float32)   # (Bt, S, d_v)
        heads.append(ctx)
    attn = jnp.concatenate(heads, axis=-1).reshape(Bt * S, H * d_v)

    # ---- residual + LayerNorm 1 (f32) ----
    r1 = x + attn
    mu1 = jnp.mean(r1, axis=-1, keepdims=True)
    var1 = jnp.mean((r1 - mu1) ** 2, axis=-1, keepdims=True)
    y = (r1 - mu1) * lax.rsqrt(var1 + LN_EPS) * g1_ref[...] + b1_ref[...]

    # ---- position-wise FFN (bf16 MXU operands, f32 accumulate) ----
    h1 = jnp.maximum(
        jnp.dot(y.astype(mxu_dtype), w1_ref[...],
                preferred_element_type=jnp.float32), 0.0)
    ffn = jnp.dot(h1.astype(mxu_dtype), w2_ref[...],
                  preferred_element_type=jnp.float32)

    # ---- residual + LayerNorm 2 (f32) ----
    r2 = y + ffn
    mu2 = jnp.mean(r2, axis=-1, keepdims=True)
    var2 = jnp.mean((r2 - mu2) ** 2, axis=-1, keepdims=True)
    out = (r2 - mu2) * lax.rsqrt(var2 + LN_EPS) * g2_ref[...] + b2_ref[...]

    o_ref[...] = out.astype(o_ref.dtype)


def _vmem_limit_bytes():
    """~85% of physical VMEM (capped), instead of the 16/32 MiB default scoped
    limit, so the full per-layer weight set double-buffers across layers."""
    cap = None
    try:
        info = pltpu.get_tpu_info()
        for name in ("vmem_capacity_bytes", "vmem_size_bytes", "vmem_bytes"):
            cap = getattr(info, name, None)
            if cap:
                break
    except Exception:
        cap = None
    if not cap:
        return 64 * 1024 * 1024        # safe on every current generation
    return min(int(cap * 0.85), 112 * 1024 * 1024)


def prepare_decoder_params(all_params, *, num_heads, d_k,
                           mxu_dtype=jnp.bfloat16):
    """Stack per-layer params ONCE (outside the forward wrapper): fold the
    1/sqrt(d_k) scale into Wq, fuse Wq|Wk|Wv head-major, cast matmul weights
    to bf16 for the MXU (halves weight DMA bytes / VMEM footprint)."""
    L = len(all_params)
    D = all_params[0][0].shape[1]
    d_v = all_params[0][2].shape[-1]
    scale = 1.0 / math.sqrt(d_k)
    wqkv_l, g1_l, b1_l, w1_l, w2_l, g2_l, b2_l = ([] for _ in range(7))
    for (wq, wk, wv, g1, b1, w1, w2, g2, b2) in all_params:
        wq_f = jnp.transpose(wq * scale, (1, 0, 2)).reshape(D, num_heads * d_k)
        wk_f = jnp.transpose(wk, (1, 0, 2)).reshape(D, num_heads * d_k)
        wv_f = jnp.transpose(wv, (1, 0, 2)).reshape(D, num_heads * d_v)
        wqkv_l.append(jnp.concatenate([wq_f, wk_f, wv_f], -1).astype(mxu_dtype))
        g1_l.append(g1.reshape(1, D)); b1_l.append(b1.reshape(1, D))
        w1_l.append(w1.astype(mxu_dtype)); w2_l.append(w2.astype(mxu_dtype))
        g2_l.append(g2.reshape(1, D)); b2_l.append(b2.reshape(1, D))
    stacked = dict(
        wqkv=jnp.stack(wqkv_l),                     # (L, D, 2*H*d_k + H*d_v)
        g1=jnp.stack(g1_l), b1=jnp.stack(b1_l),     # (L, 1, D) f32
        w1=jnp.stack(w1_l), w2=jnp.stack(w2_l),     # (L, D, 4D), (L, 4D, D)
        g2=jnp.stack(g2_l), b2=jnp.stack(b2_l))
    dims = dict(num_layers=L, d_embed=D, num_heads=num_heads, d_k=d_k, d_v=d_v)
    return stacked, dims


def decoder_pallas(z, stacked, dims, *, batch_tile=None,
                   mxu_dtype=jnp.bfloat16):
    B, S, D = z.shape
    L, H = dims["num_layers"], dims["num_heads"]
    d_k, d_v = dims["d_k"], dims["d_v"]
    assert D == dims["d_embed"] and H * d_v == D

    # Weight HBM traffic scales with the number of batch blocks, so default to
    # a single block (v5e/v6e are single-TensorCore; on v7x only pass a smaller
    # batch_tile when the kernel is compute-bound).
    Bt = B if batch_tile is None else batch_tile
    assert B % Bt == 0
    nb = B // Bt
    assert nb == 1 or (Bt * S) % 8 == 0

    wqkv = stacked["wqkv"]
    g1s, b1s, w1s, w2s = stacked["g1"], stacked["b1"], stacked["w1"], stacked["w2"]
    g2s, b2s = stacked["g2"], stacked["b2"]
    n_qkv = wqkv.shape[-1]
    d_ff = w1s.shape[-1]

    zf = z.reshape(B * S, D)

    kernel = functools.partial(
        _decoder_kernel, num_heads=H, d_k=d_k, d_v=d_v,
        batch_tile=Bt, seq_len=S, mxu_dtype=mxu_dtype)

    # Advisory cost so XLA schedules surrounding ops around one fused call.
    w_bytes = sum(a.size * a.dtype.itemsize for a in (wqkv, w1s, w2s))
    ln_bytes = sum(a.size * a.dtype.itemsize for a in (g1s, b1s, g2s, b2s))
    flops = 2 * L * (B * S * D * n_qkv
                     + B * H * S * S * (d_k + d_v)
                     + 2 * B * S * D * d_ff)
    cost = pl.CostEstimate(
        flops=int(flops),
        transcendentals=int(L * B * H * S * S + 2 * L * B * S),
        bytes_accessed=int(nb * (w_bytes + ln_bytes)
                           + 2 * B * S * D * z.dtype.itemsize))

    sq = pl.Squeezed()
    lmap = lambda b, l: (l, 0, 0)

    out = pl.pallas_call(
        kernel,
        out_shape=jax.ShapeDtypeStruct((B * S, D), z.dtype),
        grid=(nb, L),
        in_specs=[
            pl.BlockSpec((Bt * S, D), lambda b, l: (b, 0)),    # activations
            pl.BlockSpec((sq, D, n_qkv), lmap),                # fused Wq|Wk|Wv
            pl.BlockSpec((sq, 1, D), lmap),                    # LN1 gamma
            pl.BlockSpec((sq, 1, D), lmap),                    # LN1 beta
            pl.BlockSpec((sq, D, d_ff), lmap),                 # FFN W1
            pl.BlockSpec((sq, d_ff, D), lmap),                 # FFN W2
            pl.BlockSpec((sq, 1, D), lmap),                    # LN2 gamma
            pl.BlockSpec((sq, 1, D), lmap),                    # LN2 beta
        ],
        out_specs=pl.BlockSpec((Bt * S, D), lambda b, l: (b, 0)),
        scratch_shapes=[pltpu.VMEM((S, S), jnp.float32)],      # causal mask
        compiler_params=pltpu.CompilerParams(
            dimension_semantics=("parallel", "arbitrary"),
            vmem_limit_bytes=_vmem_limit_bytes()),
        cost_estimate=cost,
    )(zf, wqkv, g1s, b1s, w1s, w2s, g2s, b2s)
    return out.reshape(B, S, D)


# ---------------- pure-JAX reference (mirrors the PyTorch forward) -----------
def _layer_ref(z, params, num_heads, d_k):
    wq, wk, wv, g1, b1, w1, w2, g2, b2 = params
    B, S, D = z.shape
    tri = jnp.tril(jnp.ones((S, S), bool))

    def ln(x, g, b):
        mu = x.mean(-1, keepdims=True)
        var = ((x - mu) ** 2).mean(-1, keepdims=True)
        return (x - mu) / jnp.sqrt(var + LN_EPS) * g + b

    heads = []
    for h in range(num_heads):
        q = z @ wq[h]
        k = z @ wk[h]
        v = z @ wv[h]
        w = q @ jnp.swapaxes(k, -2, -1) / (d_k ** 0.5)
        w = jnp.where(tri, w, 0.0)
        w = jnp.where(w == 0.0, -jnp.inf, w)
        w = jax.nn.softmax(w, axis=-1)
        heads.append(w @ v)
    attn = jnp.concatenate(heads, axis=-1)
    y = ln(z + attn, g1[0], b1[0])
    ffn = jnp.maximum(y @ w1, 0.0) @ w2
    return ln(y + ffn, g2[0], b2[0])


def decoder_ref(z, all_params, *, num_heads, d_k):
    for params in all_params:
        z = _layer_ref(z, params, num_heads, d_k)
    return z


# ---------------------------- parameter init --------------------------------
def init_decoder_params(key, num_layers, d_embed, num_heads, d_k, d_v):
    params = []
    for _ in range(num_layers):
        key, *ks = jax.random.split(key, 6)
        wq = 0.05 * jax.random.normal(ks[0], (num_heads, d_embed, d_k), jnp.float32)
        wk = 0.05 * jax.random.normal(ks[1], (num_heads, d_embed, d_k), jnp.float32)
        wv = 0.05 * jax.random.normal(ks[2], (num_heads, d_embed, d_v), jnp.float32)
        g1 = jnp.ones((1, d_embed), jnp.float32)
        b1 = jnp.zeros((1, d_embed), jnp.float32)
        w1 = 0.05 * jax.random.normal(ks[3], (d_embed, 4 * d_embed), jnp.float32)
        w2 = 0.05 * jax.random.normal(ks[4], (4 * d_embed, d_embed), jnp.float32)
        g2 = jnp.ones((1, d_embed), jnp.float32)
        b2 = jnp.zeros((1, d_embed), jnp.float32)
        params.append((wq, wk, wv, g1, b1, w1, w2, g2, b2))
    return params


if __name__ == "__main__":
    B, S, D = 2, 8, 32
    num_heads = 4
    d_v = D // num_heads     # 8
    d_k = d_v                # d_k_sa defaults to d_v
    num_layers = 2

    key = jax.random.PRNGKey(0)
    kz, kp = jax.random.split(key)
    z = jax.random.normal(kz, (B, S, D), jnp.float32)
    params = init_decoder_params(kp, num_layers, D, num_heads, d_k, d_v)

    # Stack / fuse / bf16-cast weights once, outside the forward call.
    stacked, dims = prepare_decoder_params(params, num_heads=num_heads, d_k=d_k)

    out = decoder_pallas(z, stacked, dims)
    out = jax.block_until_ready(out)

    ref = decoder_ref(z, params, num_heads=num_heads, d_k=d_k)
    # bf16 MXU operands (vs f32 reference) => loosened tolerance.
    np.testing.assert_allclose(np.asarray(out), np.asarray(ref),
                               rtol=5e-2, atol=5e-2)
    print("KERNEL_OK")
</pallas_src>

<mosaic_0001>
module attributes {stable_mosaic.version = 11 : i64} {
  func.func @_decoder_kernel(%arg0: i32, %arg1: i32, %arg2: memref<16x32xf32, #tpu.memory_space<vmem>>, %arg3: memref<1x32x96xbf16, #tpu.memory_space<vmem>>, %arg4: memref<1x1x32xf32, #tpu.memory_space<vmem>>, %arg5: memref<1x1x32xf32, #tpu.memory_space<vmem>>, %arg6: memref<1x32x128xbf16, #tpu.memory_space<vmem>>, %arg7: memref<1x128x32xbf16, #tpu.memory_space<vmem>>, %arg8: memref<1x1x32xf32, #tpu.memory_space<vmem>>, %arg9: memref<1x1x32xf32, #tpu.memory_space<vmem>>, %arg10: memref<16x32xf32, #tpu.memory_space<vmem>>, %arg11: memref<8x8xf32, #tpu.memory_space<vmem>>) attributes {dimension_semantics = [#tpu.dimension_semantics<parallel>, #tpu.dimension_semantics<arbitrary>], iteration_bounds = array<i64: 1, 2>, scalar_prefetch = 0 : i64, scratch_operands = 1 : i64, tpu.core_type = #tpu.core_type<tc>, window_params = [{transform_indices = @transform_0, window_bounds = array<i64: 16, 32>}, {transform_indices = @transform_1, window_bounds = array<i64: 1, 32, 96>}, {transform_indices = @transform_2, window_bounds = array<i64: 1, 1, 32>}, {transform_indices = @transform_3, window_bounds = array<i64: 1, 1, 32>}, {transform_indices = @transform_4, window_bounds = array<i64: 1, 32, 128>}, {transform_indices = @transform_5, window_bounds = array<i64: 1, 128, 32>}, {transform_indices = @transform_6, window_bounds = array<i64: 1, 1, 32>}, {transform_indices = @transform_7, window_bounds = array<i64: 1, 1, 32>}, {transform_indices = @transform_8, window_bounds = array<i64: 16, 32>}]} {
    %c0_i32 = arith.constant 0 : i32
    %0 = arith.cmpi eq, %arg1, %c0_i32 : i32
    %1 = arith.extui %0 : i1 to i32
    %c0_i32_0 = arith.constant 0 : i32
    %2 = arith.cmpi ne, %1, %c0_i32_0 : i32
    scf.if %2 {
      %c0_64 = arith.constant 0 : index
      %c0_65 = arith.constant 0 : index
      %188 = vector.load %arg2[%c0_64, %c0_65] : memref<16x32xf32, #tpu.memory_space<vmem>>, vector<16x32xf32>
      %c0_66 = arith.constant 0 : index
      %c0_67 = arith.constant 0 : index
      %189 = vector.load %arg10[%c0_66, %c0_67] : memref<16x32xf32, #tpu.memory_space<vmem>>, vector<16x32xf32>
      tpu.vector_store %arg10[%c0_66, %c0_67], %188 {strides = array<i32>} : memref<16x32xf32, #tpu.memory_space<vmem>>, vector<16x32xf32>,
      %190 = tpu.iota {dimensions = array<i32: 0>} : vector<8x8xi32>
      %191 = tpu.iota {dimensions = array<i32: 1>} : vector<8x8xi32>
      %192 = arith.cmpi sge, %190, %191 : vector<8x8xi32>
      %193 = arith.extui %192 : vector<8x8xi1> to vector<8x8xi32>
      %194 = arith.sitofp %193 : vector<8x8xi32> to vector<8x8xf32>
      %c0_68 = arith.constant 0 : index
      %c0_69 = arith.constant 0 : index
      %195 = vector.load %arg11[%c0_68, %c0_69] : memref<8x8xf32, #tpu.memory_space<vmem>>, vector<8x8xf32>
      tpu.vector_store %arg11[%c0_68, %c0_69], %194 {strides = array<i32>} : memref<8x8xf32, #tpu.memory_space<vmem>>, vector<8x8xf32>,
    } else {
    }
    %c0 = arith.constant 0 : index
    %c0_1 = arith.constant 0 : index
    %3 = vector.load %arg10[%c0, %c0_1] : memref<16x32xf32, #tpu.memory_space<vmem>>, vector<16x32xf32>
    %4 = arith.truncf %3 : vector<16x32xf32> to vector<16x32xbf16>
    %c0_2 = arith.constant 0 : index
    %c0_3 = arith.constant 0 : index
    %c0_4 = arith.constant 0 : index
    %5 = vector.load %arg3[%c0_2, %c0_3, %c0_4] : memref<1x32x96xbf16, #tpu.memory_space<vmem>>, vector<1x32x96xbf16>
    %6 = vector.shape_cast %5 : vector<1x32x96xbf16> to vector<32x96xbf16>
    %cst = arith.constant dense<0.000000e+00> : vector<16x96xf32>
    %7 = tpu.matmul %4, %6, %cst {dimension_numbers = #tpu.dot_dimension_numbers<[1], [0], [0], [1], [0, 0, 1, 1], [], []>} : vector<16x32xbf16>, vector<32x96xbf16>, vector<16x96xf32> -> vector<16x96xf32>
    %c0_5 = arith.constant 0 : index
    %c0_6 = arith.constant 0 : index
    %8 = vector.load %arg11[%c0_5, %c0_6] : memref<8x8xf32, #tpu.memory_space<vmem>>, vector<8x8xf32>
    %9 = vector.extract_strided_slice %7 {offsets = [0, 0], sizes = [16, 8], strides = [1, 1]} : vector<16x96xf32> to vector<16x8xf32>
    %10 = vector.shape_cast %9 : vector<16x8xf32> to vector<2x8x8xf32>
    %11 = vector.extract_strided_slice %7 {offsets = [0, 32], sizes = [16, 8], strides = [1, 1]} : vector<16x96xf32> to vector<16x8xf32>
    %12 = vector.shape_cast %11 : vector<16x8xf32> to vector<2x8x8xf32>
    %13 = vector.extract_strided_slice %7 {offsets = [0, 64], sizes = [16, 8], strides = [1, 1]} : vector<16x96xf32> to vector<16x8xf32>
    %14 = vector.shape_cast %13 : vector<16x8xf32> to vector<2x8x8xf32>
    %15 = arith.truncf %10 : vector<2x8x8xf32> to vector<2x8x8xbf16>
    %16 = arith.truncf %12 : vector<2x8x8xf32> to vector<2x8x8xbf16>
    "tpu.trace_start"() <{level = 10 : i32, message = "bqd,bkd->bqk"}> : () -> ()
    %cst_7 = arith.constant dense<0.000000e+00> : vector<2x8x8xf32>
    %17 = tpu.matmul %15, %16, %cst_7 {dimension_numbers = #tpu.dot_dimension_numbers<[2], [2], [1], [1], [0, 0, 0, 1, 1, 1], [0], [0]>} : vector<2x8x8xbf16>, vector<2x8x8xbf16>, vector<2x8x8xf32> -> vector<2x8x8xf32>
    "tpu.trace_stop"() : () -> ()
    %18 = vector.shape_cast %8 : vector<8x8xf32> to vector<1x8x8xf32>
    %19 = vector.broadcast %18 : vector<1x8x8xf32> to vector<2x8x8xf32>
    %20 = arith.mulf %17, %19 : vector<2x8x8xf32>
    %cst_8 = arith.constant 0.000000e+00 : f32
    %21 = vector.broadcast %cst_8 : f32 to vector<2x8x8xf32>
    %22 = arith.cmpf oeq, %20, %21 : vector<2x8x8xf32>
    %cst_9 = arith.constant 0xFF800000 : f32
    %23 = vector.broadcast %cst_9 : f32 to vector<2x8x8xf32>
    %24 = arith.select %22, %23, %20 : vector<2x8x8xi1>, vector<2x8x8xf32>
    %cst_10 = arith.constant dense<0xFF800000> : vector<2x8xf32>
    %25 = vector.multi_reduction <maximumf>, %24, %cst_10 [2] : vector<2x8x8xf32> to vector<2x8xf32>
    %26 = vector.shape_cast %25 : vector<2x8xf32> to vector<2x8x1xf32>
    %27 = vector.broadcast %26 : vector<2x8x1xf32> to vector<2x8x8xf32>
    %28 = arith.subf %24, %27 : vector<2x8x8xf32>
    %29 = math.exp %28 : vector<2x8x8xf32>
    %cst_11 = arith.constant dense<0.000000e+00> : vector<2x8xf32>
    %30 = vector.multi_reduction <add>, %29, %cst_11 [2] : vector<2x8x8xf32> to vector<2x8xf32>
    %31 = vector.shape_cast %30 : vector<2x8xf32> to vector<2x8x1xf32>
    %32 = vector.broadcast %31 : vector<2x8x1xf32> to vector<2x8x8xf32>
    %33 = arith.divf %29, %32 : vector<2x8x8xf32>
    %34 = arith.truncf %33 : vector<2x8x8xf32> to vector<2x8x8xbf16>
    %35 = arith.truncf %14 : vector<2x8x8xf32> to vector<2x8x8xbf16>
    "tpu.trace_start"() <{level = 10 : i32, message = "bqk,bkd->bqd"}> : () -> ()
    %cst_12 = arith.constant dense<0.000000e+00> : vector<2x8x8xf32>
    %36 = tpu.matmul %34, %35, %cst_12 {dimension_numbers = #tpu.dot_dimension_numbers<[2], [1], [1], [2], [0, 0, 0, 1, 1, 2], [0], [0]>} : vector<2x8x8xbf16>, vector<2x8x8xbf16>, vector<2x8x8xf32> -> vector<2x8x8xf32>
    "tpu.trace_stop"() : () -> ()
    %37 = vector.extract_strided_slice %7 {offsets = [0, 8], sizes = [16, 8], strides = [1, 1]} : vector<16x96xf32> to vector<16x8xf32>
    %38 = vector.shape_cast %37 : vector<16x8xf32> to vector<2x8x8xf32>
    %39 = vector.extract_strided_slice %7 {offsets = [0, 40], sizes = [16, 8], strides = [1, 1]} : vector<16x96xf32> to vector<16x8xf32>
    %40 = vector.shape_cast %39 : vector<16x8xf32> to vector<2x8x8xf32>
    %41 = vector.extract_strided_slice %7 {offsets = [0, 72], sizes = [16, 8], strides = [1, 1]} : vector<16x96xf32> to vector<16x8xf32>
    %42 = vector.shape_cast %41 : vector<16x8xf32> to vector<2x8x8xf32>
    %43 = arith.truncf %38 : vector<2x8x8xf32> to vector<2x8x8xbf16>
    %44 = arith.truncf %40 : vector<2x8x8xf32> to vector<2x8x8xbf16>
    "tpu.trace_start"() <{level = 10 : i32, message = "bqd,bkd->bqk"}> : () -> ()
    %cst_13 = arith.constant dense<0.000000e+00> : vector<2x8x8xf32>
    %45 = tpu.matmul %43, %44, %cst_13 {dimension_numbers = #tpu.dot_dimension_numbers<[2], [2], [1], [1], [0, 0, 0, 1, 1, 1], [0], [0]>} : vector<2x8x8xbf16>, vector<2x8x8xbf16>, vector<2x8x8xf32> -> vector<2x8x8xf32>
    "tpu.trace_stop"() : () -> ()
    %46 = vector.shape_cast %8 : vector<8x8xf32> to vector<1x8x8xf32>
    %47 = vector.broadcast %46 : vector<1x8x8xf32> to vector<2x8x8xf32>
    %48 = arith.mulf %45, %47 : vector<2x8x8xf32>
    %cst_14 = arith.constant 0.000000e+00 : f32
    %49 = vector.broadcast %cst_14 : f32 to vector<2x8x8xf32>
    %50 = arith.cmpf oeq, %48, %49 : vector<2x8x8xf32>
    %cst_15 = arith.constant 0xFF800000 : f32
    %51 = vector.broadcast %cst_15 : f32 to vector<2x8x8xf32>
    %52 = arith.select %50, %51, %48 : vector<2x8x8xi1>, vector<2x8x8xf32>
    %cst_16 = arith.constant dense<0xFF800000> : vector<2x8xf32>
    %53 = vector.multi_reduction <maximumf>, %52, %cst_16 [2] : vector<2x8x8xf32> to vector<2x8xf32>
    %54 = vector.shape_cast %53 : vector<2x8xf32> to vector<2x8x1xf32>
    %55 = vector.broadcast %54 : vector<2x8x1xf32> to vector<2x8x8xf32>
    %56 = arith.subf %52, %55 : vector<2x8x8xf32>
    %57 = math.exp %56 : vector<2x8x8xf32>
    %cst_17 = arith.constant dense<0.000000e+00> : vector<2x8xf32>
    %58 = vector.multi_reduction <add>, %57, %cst_17 [2] : vector<2x8x8xf32> to vector<2x8xf32>
    %59 = vector.shape_cast %58 : vector<2x8xf32> to vector<2x8x1xf32>
    %60 = vector.broadcast %59 : vector<2x8x1xf32> to vector<2x8x8xf32>
    %61 = arith.divf %57, %60 : vector<2x8x8xf32>
    %62 = arith.truncf %61 : vector<2x8x8xf32> to vector<2x8x8xbf16>
    %63 = arith.truncf %42 : vector<2x8x8xf32> to vector<2x8x8xbf16>
    "tpu.trace_start"() <{level = 10 : i32, message = "bqk,bkd->bqd"}> : () -> ()
    %cst_18 = arith.constant dense<0.000000e+00> : vector<2x8x8xf32>
    %64 = tpu.matmul %62, %63, %cst_18 {dimension_numbers = #tpu.dot_dimension_numbers<[2], [1], [1], [2], [0, 0, 0, 1, 1, 2], [0], [0]>} : vector<2x8x8xbf16>, vector<2x8x8xbf16>, vector<2x8x8xf32> -> vector<2x8x8xf32>
    "tpu.trace_stop"() : () -> ()
    %65 = vector.extract_strided_slice %7 {offsets = [0, 16], sizes = [16, 8], strides = [1, 1]} : vector<16x96xf32> to vector<16x8xf32>
    %66 = vector.shape_cast %65 : vector<16x8xf32> to vector<2x8x8xf32>
    %67 = vector.extract_strided_slice %7 {offsets = [0, 48], sizes = [16, 8], strides = [1, 1]} : vector<16x96xf32> to vector<16x8xf32>
    %68 = vector.shape_cast %67 : vector<16x8xf32> to vector<2x8x8xf32>
    %69 = vector.extract_strided_slice %7 {offsets = [0, 80], sizes = [16, 8], strides = [1, 1]} : vector<16x96xf32> to vector<16x8xf32>
    %70 = vector.shape_cast %69 : vector<16x8xf32> to vector<2x8x8xf32>
    %71 = arith.truncf %66 : vector<2x8x8xf32> to vector<2x8x8xbf16>
    %72 = arith.truncf %68 : vector<2x8x8xf32> to vector<2x8x8xbf16>
    "tpu.trace_start"() <{level = 10 : i32, message = "bqd,bkd->bqk"}> : () -> ()
    %cst_19 = arith.constant dense<0.000000e+00> : vector<2x8x8xf32>
    %73 = tpu.matmul %71, %72, %cst_19 {dimension_numbers = #tpu.dot_dimension_numbers<[2], [2], [1], [1], [0, 0, 0, 1, 1, 1], [0], [0]>} : vector<2x8x8xbf16>, vector<2x8x8xbf16>, vector<2x8x8xf32> -> vector<2x8x8xf32>
    "tpu.trace_stop"() : () -> ()
    %74 = vector.shape_cast %8 : vector<8x8xf32> to vector<1x8x8xf32>
    %75 = vector.broadcast %74 : vector<1x8x8xf32> to vector<2x8x8xf32>
    %76 = arith.mulf %73, %75 : vector<2x8x8xf32>
    %cst_20 = arith.constant 0.000000e+00 : f32
    %77 = vector.broadcast %cst_20 : f32 to vector<2x8x8xf32>
    %78 = arith.cmpf oeq, %76, %77 : vector<2x8x8xf32>
    %cst_21 = arith.constant 0xFF800000 : f32
    %79 = vector.broadcast %cst_21 : f32 to vector<2x8x8xf32>
    %80 = arith.select %78, %79, %76 : vector<2x8x8xi1>, vector<2x8x8xf32>
    %cst_22 = arith.constant dense<0xFF800000> : vector<2x8xf32>
    %81 = vector.multi_reduction <maximumf>, %80, %cst_22 [2] : vector<2x8x8xf32> to vector<2x8xf32>
    %82 = vector.shape_cast %81 : vector<2x8xf32> to vector<2x8x1xf32>
    %83 = vector.broadcast %82 : vector<2x8x1xf32> to vector<2x8x8xf32>
    %84 = arith.subf %80, %83 : vector<2x8x8xf32>
    %85 = math.exp %84 : vector<2x8x8xf32>
    %cst_23 = arith.constant dense<0.000000e+00> : vector<2x8xf32>
    %86 = vector.multi_reduction <add>, %85, %cst_23 [2] : vector<2x8x8xf32> to vector<2x8xf32>
    %87 = vector.shape_cast %86 : vector<2x8xf32> to vector<2x8x1xf32>
    %88 = vector.broadcast %87 : vector<2x8x1xf32> to vector<2x8x8xf32>
    %89 = arith.divf %85, %88 : vector<2x8x8xf32>
    %90 = arith.truncf %89 : vector<2x8x8xf32> to vector<2x8x8xbf16>
    %91 = arith.truncf %70 : vector<2x8x8xf32> to vector<2x8x8xbf16>
    "tpu.trace_start"() <{level = 10 : i32, message = "bqk,bkd->bqd"}> : () -> ()
    %cst_24 = arith.constant dense<0.000000e+00> : vector<2x8x8xf32>
    %92 = tpu.matmul %90, %91, %cst_24 {dimension_numbers = #tpu.dot_dimension_numbers<[2], [1], [1], [2], [0, 0, 0, 1, 1, 2], [0], [0]>} : vector<2x8x8xbf16>, vector<2x8x8xbf16>, vector<2x8x8xf32> -> vector<2x8x8xf32>
    "tpu.trace_stop"() : () -> ()
    %93 = vector.extract_strided_slice %7 {offsets = [0, 24], sizes = [16, 8], strides = [1, 1]} : vector<16x96xf32> to vector<16x8xf32>
    %94 = vector.shape_cast %93 : vector<16x8xf32> to vector<2x8x8xf32>
    %95 = vector.extract_strided_slice %7 {offsets = [0, 56], sizes = [16, 8], strides = [1, 1]} : vector<16x96xf32> to vector<16x8xf32>
    %96 = vector.shape_cast %95 : vector<16x8xf32> to vector<2x8x8xf32>
    %97 = vector.extract_strided_slice %7 {offsets = [0, 88], sizes = [16, 8], strides = [1, 1]} : vector<16x96xf32> to vector<16x8xf32>
    %98 = vector.shape_cast %97 : vector<16x8xf32> to vector<2x8x8xf32>
    %99 = arith.truncf %94 : vector<2x8x8xf32> to vector<2x8x8xbf16>
    %100 = arith.truncf %96 : vector<2x8x8xf32> to vector<2x8x8xbf16>
    "tpu.trace_start"() <{level = 10 : i32, message = "bqd,bkd->bqk"}> : () -> ()
    %cst_25 = arith.constant dense<0.000000e+00> : vector<2x8x8xf32>
    %101 = tpu.matmul %99, %100, %cst_25 {dimension_numbers = #tpu.dot_dimension_numbers<[2], [2], [1], [1], [0, 0, 0, 1, 1, 1], [0], [0]>} : vector<2x8x8xbf16>, vector<2x8x8xbf16>, vector<2x8x8xf32> -> vector<2x8x8xf32>
    "tpu.trace_stop"() : () -> ()
    %102 = vector.shape_cast %8 : vector<8x8xf32> to vector<1x8x8xf32>
    %103 = vector.broadcast %102 : vector<1x8x8xf32> to vector<2x8x8xf32>
    %104 = arith.mulf %101, %103 : vector<2x8x8xf32>
    %cst_26 = arith.constant 0.000000e+00 : f32
    %105 = vector.broadcast %cst_26 : f32 to vector<2x8x8xf32>
    %106 = arith.cmpf oeq, %104, %105 : vector<2x8x8xf32>
    %cst_27 = arith.constant 0xFF800000 : f32
    %107 = vector.broadcast %cst_27 : f32 to vector<2x8x8xf32>
    %108 = arith.select %106, %107, %104 : vector<2x8x8xi1>, vector<2x8x8xf32>
    %cst_28 = arith.constant dense<0xFF800000> : vector<2x8xf32>
    %109 = vector.multi_reduction <maximumf>, %108, %cst_28 [2] : vector<2x8x8xf32> to vector<2x8xf32>
    %110 = vector.shape_cast %109 : vector<2x8xf32> to vector<2x8x1xf32>
    %111 = vector.broadcast %110 : vector<2x8x1xf32> to vector<2x8x8xf32>
    %112 = arith.subf %108, %111 : vector<2x8x8xf32>
    %113 = math.exp %112 : vector<2x8x8xf32>
    %cst_29 = arith.constant dense<0.000000e+00> : vector<2x8xf32>
    %114 = vector.multi_reduction <add>, %113, %cst_29 [2] : vector<2x8x8xf32> to vector<2x8xf32>
    %115 = vector.shape_cast %114 : vector<2x8xf32> to vector<2x8x1xf32>
    %116 = vector.broadcast %115 : vector<2x8x1xf32> to vector<2x8x8xf32>
    %117 = arith.divf %113, %116 : vector<2x8x8xf32>
    %118 = arith.truncf %117 : vector<2x8x8xf32> to vector<2x8x8xbf16>
    %119 = arith.truncf %98 : vector<2x8x8xf32> to vector<2x8x8xbf16>
    "tpu.trace_start"() <{level = 10 : i32, message = "bqk,bkd->bqd"}> : () -> ()
    %cst_30 = arith.constant dense<0.000000e+00> : vector<2x8x8xf32>
    %120 = tpu.matmul %118, %119, %cst_30 {dimension_numbers = #tpu.dot_dimension_numbers<[2], [1], [1], [2], [0, 0, 0, 1, 1, 2], [0], [0]>} : vector<2x8x8xbf16>, vector<2x8x8xbf16>, vector<2x8x8xf32> -> vector<2x8x8xf32>
    "tpu.trace_stop"() : () -> ()
    %121 = tpu.concatenate %36, %64, %92, %120 in 2 : vector<2x8x8xf32>, vector<2x8x8xf32>, vector<2x8x8xf32>, vector<2x8x8xf32> -> vector<2x8x32xf32>
    %122 = vector.shape_cast %121 : vector<2x8x32xf32> to vector<16x32xf32>
    %123 = arith.addf %3, %122 : vector<16x32xf32>
    %cst_31 = arith.constant dense<0.000000e+00> : vector<16xf32>
    %124 = vector.multi_reduction <add>, %123, %cst_31 [1] : vector<16x32xf32> to vector<16xf32>
    %125 = vector.shape_cast %124 : vector<16xf32> to vector<16x1xf32>
    %cst_32 = arith.constant 3.200000e+01 : f32
    %126 = vector.broadcast %cst_32 : f32 to vector<16x1xf32>
    %127 = arith.divf %125, %126 : vector<16x1xf32>
    %128 = vector.broadcast %127 : vector<16x1xf32> to vector<16x32xf32>
    %129 = arith.subf %123, %128 : vector<16x32xf32>
    %130 = arith.mulf %129, %129 : vector<16x32xf32>
    %cst_33 = arith.constant dense<0.000000e+00> : vector<16xf32>
    %131 = vector.multi_reduction <add>, %130, %cst_33 [1] : vector<16x32xf32> to vector<16xf32>
    %132 = vector.shape_cast %131 : vector<16xf32> to vector<16x1xf32>
    %cst_34 = arith.constant 3.200000e+01 : f32
    %133 = vector.broadcast %cst_34 : f32 to vector<16x1xf32>
    %134 = arith.divf %132, %133 : vector<16x1xf32>
    %135 = vector.broadcast %127 : vector<16x1xf32> to vector<16x32xf32>
    %136 = arith.subf %123, %135 : vector<16x32xf32>
    %cst_35 = arith.constant 9.99999974E-6 : f32
    %137 = vector.broadcast %cst_35 : f32 to vector<16x1xf32>
    %138 = arith.addf %134, %137 : vector<16x1xf32>
    %139 = math.rsqrt %138 : vector<16x1xf32>
    %140 = vector.broadcast %139 : vector<16x1xf32> to vector<16x32xf32>
    %141 = arith.mulf %136, %140 : vector<16x32xf32>
    %c0_36 = arith.constant 0 : index
    %c0_37 = arith.constant 0 : index
    %c0_38 = arith.constant 0 : index
    %142 = vector.load %arg4[%c0_36, %c0_37, %c0_38] : memref<1x1x32xf32, #tpu.memory_space<vmem>>, vector<1x1x32xf32>
    %143 = vector.shape_cast %142 : vector<1x1x32xf32> to vector<1x32xf32>
    %144 = vector.broadcast %143 : vector<1x32xf32> to vector<16x32xf32>
    %145 = arith.mulf %141, %144 : vector<16x32xf32>
    %c0_39 = arith.constant 0 : index
    %c0_40 = arith.constant 0 : index
    %c0_41 = arith.constant 0 : index
    %146 = vector.load %arg5[%c0_39, %c0_40, %c0_41] : memref<1x1x32xf32, #tpu.memory_space<vmem>>, vector<1x1x32xf32>
    %147 = vector.shape_cast %146 : vector<1x1x32xf32> to vector<1x32xf32>
    %148 = vector.broadcast %147 : vector<1x32xf32> to vector<16x32xf32>
    %149 = arith.addf %145, %148 : vector<16x32xf32>
    %150 = arith.truncf %149 : vector<16x32xf32> to vector<16x32xbf16>
    %c0_42 = arith.constant 0 : index
    %c0_43 = arith.constant 0 : index
    %c0_44 = arith.constant 0 : index
    %151 = vector.load %arg6[%c0_42, %c0_43, %c0_44] : memref<1x32x128xbf16, #tpu.memory_space<vmem>>, vector<1x32x128xbf16>
    %152 = vector.shape_cast %151 : vector<1x32x128xbf16> to vector<32x128xbf16>
    %cst_45 = arith.constant dense<0.000000e+00> : vector<16x128xf32>
    %153 = tpu.matmul %150, %152, %cst_45 {dimension_numbers = #tpu.dot_dimension_numbers<[1], [0], [0], [1], [0, 0, 1, 1], [], []>} : vector<16x32xbf16>, vector<32x128xbf16>, vector<16x128xf32> -> vector<16x128xf32>
    %cst_46 = arith.constant 0.000000e+00 : f32
    %154 = vector.broadcast %cst_46 : f32 to vector<16x128xf32>
    %155 = arith.maximumf %153, %154 : vector<16x128xf32>
    %156 = arith.truncf %155 : vector<16x128xf32> to vector<16x128xbf16>
    %c0_47 = arith.constant 0 : index
    %c0_48 = arith.constant 0 : index
    %c0_49 = arith.constant 0 : index
    %157 = vector.load %arg7[%c0_47, %c0_48, %c0_49] : memref<1x128x32xbf16, #tpu.memory_space<vmem>>, vector<1x128x32xbf16>
    %158 = vector.shape_cast %157 : vector<1x128x32xbf16> to vector<128x32xbf16>
    %cst_50 = arith.constant dense<0.000000e+00> : vector<16x32xf32>
    %159 = tpu.matmul %156, %158, %cst_50 {dimension_numbers = #tpu.dot_dimension_numbers<[1], [0], [0], [1], [0, 0, 1, 1], [], []>} : vector<16x128xbf16>, vector<128x32xbf16>, vector<16x32xf32> -> vector<16x32xf32>
    %160 = arith.addf %149, %159 : vector<16x32xf32>
    %cst_51 = arith.constant dense<0.000000e+00> : vector<16xf32>
    %161 = vector.multi_reduction <add>, %160, %cst_51 [1] : vector<16x32xf32> to vector<16xf32>
    %162 = vector.shape_cast %161 : vector<16xf32> to vector<16x1xf32>
    %cst_52 = arith.constant 3.200000e+01 : f32
    %163 = vector.broadcast %cst_52 : f32 to vector<16x1xf32>
    %164 = arith.divf %162, %163 : vector<16x1xf32>
    %165 = vector.broadcast %164 : vector<16x1xf32> to vector<16x32xf32>
    %166 = arith.subf %160, %165 : vector<16x32xf32>
    %167 = arith.mulf %166, %166 : vector<16x32xf32>
    %cst_53 = arith.constant dense<0.000000e+00> : vector<16xf32>
    %168 = vector.multi_reduction <add>, %167, %cst_53 [1] : vector<16x32xf32> to vector<16xf32>
    %169 = vector.shape_cast %168 : vector<16xf32> to vector<16x1xf32>
    %cst_54 = arith.constant 3.200000e+01 : f32
    %170 = vector.broadcast %cst_54 : f32 to vector<16x1xf32>
    %171 = arith.divf %169, %170 : vector<16x1xf32>
    %172 = vector.broadcast %164 : vector<16x1xf32> to vector<16x32xf32>
    %173 = arith.subf %160, %172 : vector<16x32xf32>
    %cst_55 = arith.constant 9.99999974E-6 : f32
    %174 = vector.broadcast %cst_55 : f32 to vector<16x1xf32>
    %175 = arith.addf %171, %174 : vector<16x1xf32>
    %176 = math.rsqrt %175 : vector<16x1xf32>
    %177 = vector.broadcast %176 : vector<16x1xf32> to vector<16x32xf32>
    %178 = arith.mulf %173, %177 : vector<16x32xf32>
    %c0_56 = arith.constant 0 : index
    %c0_57 = arith.constant 0 : index
    %c0_58 = arith.constant 0 : index
    %179 = vector.load %arg8[%c0_56, %c0_57, %c0_58] : memref<1x1x32xf32, #tpu.memory_space<vmem>>, vector<1x1x32xf32>
    %180 = vector.shape_cast %179 : vector<1x1x32xf32> to vector<1x32xf32>
    %181 = vector.broadcast %180 : vector<1x32xf32> to vector<16x32xf32>
    %182 = arith.mulf %178, %181 : vector<16x32xf32>
    %c0_59 = arith.constant 0 : index
    %c0_60 = arith.constant 0 : index
    %c0_61 = arith.constant 0 : index
    %183 = vector.load %arg9[%c0_59, %c0_60, %c0_61] : memref<1x1x32xf32, #tpu.memory_space<vmem>>, vector<1x1x32xf32>
    %184 = vector.shape_cast %183 : vector<1x1x32xf32> to vector<1x32xf32>
    %185 = vector.broadcast %184 : vector<1x32xf32> to vector<16x32xf32>
    %186 = arith.addf %182, %185 : vector<16x32xf32>
    %c0_62 = arith.constant 0 : index
    %c0_63 = arith.constant 0 : index
    %187 = vector.load %arg10[%c0_62, %c0_63] : memref<16x32xf32, #tpu.memory_space<vmem>>, vector<16x32xf32>
    tpu.vector_store %arg10[%c0_62, %c0_63], %186 {strides = array<i32>} : memref<16x32xf32, #tpu.memory_space<vmem>>, vector<16x32xf32>,
    return
  }
  func.func @transform_0(%arg0: i32, %arg1: i32) -> (i32, i32) {
    %c0_i32 = arith.constant 0 : i32
    %c0_i32_0 = arith.constant 0 : i32
    return %arg0, %c0_i32 : i32, i32
  }
  func.func @transform_1(%arg0: i32, %arg1: i32) -> (i32, i32, i32) {
    %c0_i32 = arith.constant 0 : i32
    %c0_i32_0 = arith.constant 0 : i32
    %c0_i32_1 = arith.constant 0 : i32
    return %arg1, %c0_i32, %c0_i32_0 : i32, i32, i32
  }
  func.func @transform_2(%arg0: i32, %arg1: i32) -> (i32, i32, i32) {
    %c0_i32 = arith.constant 0 : i32
    %c0_i32_0 = arith.constant 0 : i32
    %c0_i32_1 = arith.constant 0 : i32
    return %arg1, %c0_i32, %c0_i32_0 : i32, i32, i32
  }
  func.func @transform_3(%arg0: i32, %arg1: i32) -> (i32, i32, i32) {
    %c0_i32 = arith.constant 0 : i32
    %c0_i32_0 = arith.constant 0 : i32
    %c0_i32_1 = arith.constant 0 : i32
    return %arg1, %c0_i32, %c0_i32_0 : i32, i32, i32
  }
  func.func @transform_4(%arg0: i32, %arg1: i32) -> (i32, i32, i32) {
    %c0_i32 = arith.constant 0 : i32
    %c0_i32_0 = arith.constant 0 : i32
    %c0_i32_1 = arith.constant 0 : i32
    return %arg1, %c0_i32, %c0_i32_0 : i32, i32, i32
  }
  func.func @transform_5(%arg0: i32, %arg1: i32) -> (i32, i32, i32) {
    %c0_i32 = arith.constant 0 : i32
    %c0_i32_0 = arith.constant 0 : i32
    %c0_i32_1 = arith.constant 0 : i32
    return %arg1, %c0_i32, %c0_i32_0 : i32, i32, i32
  }
  func.func @transform_6(%arg0: i32, %arg1: i32) -> (i32, i32, i32) {
    %c0_i32 = arith.constant 0 : i32
    %c0_i32_0 = arith.constant 0 : i32
    %c0_i32_1 = arith.constant 0 : i32
    return %arg1, %c0_i32, %c0_i32_0 : i32, i32, i32
  }
  func.func @transform_7(%arg0: i32, %arg1: i32) -> (i32, i32, i32) {
    %c0_i32 = arith.constant 0 : i32
    %c0_i32_0 = arith.constant 0 : i32
    %c0_i32_1 = arith.constant 0 : i32
    return %arg1, %c0_i32, %c0_i32_0 : i32, i32, i32
  }
  func.func @transform_8(%arg0: i32, %arg1: i32) -> (i32, i32) {
    %c0_i32 = arith.constant 0 : i32
    %c0_i32_0 = arith.constant 0 : i32
    return %arg0, %c0_i32 : i32, i32
  }
}

</mosaic_0001>

<bundles_post_ra>
// kernel: tpu_custom_call.1
= control target key start
LH: loop header
LB: loop body
LE: loop exit
PB: predicated region body
PF: predicated region fallthrough
CT: control target
= control target key end

     0   :  { %s3508_s0 = inlined_call_operand.hbm [shape: f32[16,32], index: 0, kind: input, shape index: {}]   ;;  %s3509_s1 = inlined_call_operand.hbm [shape: bf16[2,32,96], index: 1, kind: input, shape index: {}]   ;;  %s3510_s2 = inlined_call_operand.hbm [shape: f32[2,1,32], index: 2, kind: input, shape index: {}]   ;;  %s3511_s3 = inlined_call_operand.hbm [shape: f32[2,1,32], index: 3, kind: input, shape index: {}]   ;;  %s3512_s4 = inlined_call_operand.hbm [shape: bf16[2,32,128], index: 4, kind: input, shape index: {}]   ;;  %s3513_s5 = inlined_call_operand.hbm [shape: bf16[2,128,32], index: 5, kind: input, shape index: {}]   ;;  %s3514_s6 = inlined_call_operand.hbm [shape: f32[2,1,32], index: 6, kind: input, shape index: {}]   ;;  %s3515_s7 = inlined_call_operand.hbm [shape: f32[2,1,32], index: 7, kind: input, shape index: {}]   ;;  %s3516_s8 = inlined_call_operand.hbm [shape: f32[16,32], index: 8, kind: output, shape index: {}]  }
   0x1   :  { %3541 = sst [smem:[#allocation31_spill]] %s3509_s1 }
   0x2   :  { %3542 = sst [smem:[#allocation32_spill]] %s3511_s3 }
   0x3   :  { %3543 = sst [smem:[#allocation33_spill]] %s3513_s5 }
   0x4   :  { %3544 = sst [smem:[#allocation34_spill]] %s3516_s8 }
   0x5   :  { %13 = vsyncpa [#allocation4], 0 }
   0x6   :  { %14 = vsyncpa [#allocation7], 0 }
   0x7   :  { %16 = vsyncpa [#allocation7 + $0x1], 0 }
   0x8   :  { %17 = vsyncpa [#allocation10], 0 }
   0x9   :  { %19 = vsyncpa [#allocation10 + $0x1], 0 }
   0xa   :  { %20 = vsyncpa [#allocation13], 0 }
   0xb   :  { %22 = vsyncpa [#allocation13 + $0x1], 0 }
   0xc   :  { %23 = vsyncpa [#allocation16], 0 }
   0xd   :  { %25 = vsyncpa [#allocation16 + $0x1], 0 }
   0xe   :  { %26 = vsyncpa [#allocation5], 0  ;;  %s2884_s27 = smov 0   ;;  %s2886_s28 = smov 0  }
   0xf   :  { %s2888_s29 = smov 0   ;;  %s2890_s30 = smov 0  }
  0x10   :  { %s2892_s9 = smov 0   ;;  %s2894_s10 = smov 0  }
  0x11 LB: > { %3545 = sst [smem:[#allocation24_spill]] %s2794_s29  ;;  %s41_s11 = sadd.s32 1, %s2802_s9  ;;  %s2806_s10 = sphi %s2894_s10, %s32_s10   ;;  %s2802_s9 = sphi %s2892_s9, %s3583_s9   ;;  %s2798_s30 = sphi %s2890_s30, %s3582_s30   ;;  %s2794_s29 = sphi %s2888_s29, %s3581_s29   ;;  %s2790_s28 = sphi %s2886_s28, %s3585_s28   ;;  %s2786_s27 = sphi %s2884_s27, %s3584_s27  }
  0x12   : > { %3546 = sst [smem:[#allocation25_spill]] %s2798_s30  ;;  %s77_s12 = sadd.s32 1, %s2794_s29 }
  0x13   : > { %3547 = sst [smem:[#allocation26_spill]] %s2802_s9  ;;  %p42_p0 = scmp.ge.s32.totalorder %s41_s11, 2 }
  0x14   : > { %3548 = sst [smem:[#allocation27_spill]] %s2806_s10  ;;  %p84_p1 = scmp.ne.s32.totalorder %s2794_s29, %s2790_s28 }
  0x15   : > { %p85_p2 = scmp.eq.s32.totalorder %s2806_s10, 0  ;;  %s3587_s11 = smov (%p42_p0, %s41_s11), 0 }
  0x16   : > { %3549 = sst [smem:[#allocation28_spill]] %s3587_s11  ;;  %p2344_p4 = scmp.lt.s32.totalorder %s2806_s10, 2 }
  0x17   : > { %p86_p3 = por %p85_p2, %p84_p1  ;;  %s74_s13 = ssub.s32 %s2802_s9, %s3587_s11 }
  0x18   : > { %s2925_s14 = sand.u32 1, %s2806_s10   ;;  %p75_p5 = scmp.eq.s32.totalorder %s74_s13, 0 }
  0x19   : > { %s2928_s15 = sand.u32 1, %s2794_s29   ;;  %s3518_s16 = sshll.u32 %s2802_s9, 8 }
  0x1a   : > { %s2932_s17 = scalar_select %p75_p5, %s2794_s29, %s77_s12  }
  0x1b   : > { %s3517_s18 = sshll.u32 %s2928_s15, 4  ;;  %s3551_s1 = sld [smem:[#allocation31_spill]] }
  0x1c   : > { %3550 = sst [smem:[#allocation29_spill]] %s2932_s17  ;;  %p2942_p6 = pnand %p2344_p4, %p86_p3 }
  0x1d   : > { %s316_s23 = scalar_lea.vmem [#allocation6], %s3517_s18  ;;  %s3522_s25 = scalar_lea.sflag [#allocation7], %s2925_s14 }
  0x1e   : > { %s3552_s22 = scalar_select %p2942_p6, 1, 0 }
  0x1f   : > { %s323_s24 = sshll.u32 %s316_s23, 4  ;;  %p2955_p8 = pneg %p2942_p6  ;;  %s2948_s24 = int_to_ptr.vmem [resolvable:$true] %s323_s24 }
  0x21   : > { %s2940_s21 = scalar_lea.hbm %s3551_s1, %s3518_s16  ;;  %s2477_s20 = scalar_lea.hbm %s3551_s1, 512 }
  0x22   : > { %s2472_s26 = scalar_lea.hbm %s2940_s21, 256  ;;  %p2478_p11 = scmp.lt.u32.totalorder %s2940_s21, %s3551_s1 }
  0x23   : > { %p2473_p7 = scmp.ne.s32.totalorder %s2940_s21, %s2472_s26  ;;  %p2479_p12 = scmp.lt.u32.totalorder %s2477_s20, %s2472_s26 }
  0x24   : > { %s3553_s12 = scalar_select %p2955_p8, 1, 0 }
  0x25   : > { %p2475_p9 = pnand %p2955_p8, %p2473_p7  ;;  %p2480_p13 = por %p2479_p12, %p2478_p11 }
  0x26   : > { %p2481_p0 = scmp.lt.u32.totalorder %s2472_s26, %s2940_s21 }
  0x27   : > { %p2476_p10 = pneg %p2475_p9 }
  0x28   : > { %p2482_p1 = por %p2481_p0, %p2480_p13 }
  0x2a   : > { %p2483_p2 = pnand %p2482_p1, %p2476_p10 }
  0x2c   : > { %2486 = shalt.err (!%p2483_p2)
}
  0x2d   : > { %s2487_s16 = scalar_lea.vmem %s2948_s24, 256  ;;  %s2808_s13 = smov [#allocation6]  }
  0x2e   : > { %p2488_p3 = scmp.ne.s32.totalorder %s2948_s24, %s2487_s16  ;;  %s2492_s19 = sshll.u32 %s2808_s13, 4  ;;  %s2493_s19 = int_to_ptr.vmem [resolvable:$false] %s2492_s19 }
  0x2f   : > { %s2494_s18 = scalar_lea.vmem %s2493_s19, 512  ;;  %p2495_p7 = scmp.lt.s32.totalorder %s2948_s24, %s2493_s19 }
  0x30   : > { %p2490_p4 = pnand %p2488_p3, %p2955_p8  ;;  %p2496_p9 = scmp.lt.s32.totalorder %s2494_s18, %s2487_s16 }
  0x32   : > { %p2491_p5 = pneg %p2490_p4  ;;  %p2497_p11 = por %p2496_p9, %p2495_p7 }
  0x34   : > { %p2498_p12 = pnand %p2497_p11, %p2491_p5 }
  0x36   : > { %2501 = shalt.err (!%p2498_p12)
}
  0x37   : > { %s3523_s26 = smov 64   ;;  %s3529_s20 = smov 4  }
  0x38   : > { %2324 = dma.hbm_to_vmem [thread:$0]  (!%p2942_p6), %s2940_s21, 256, %s2948_s24, %s3522_s25, %s3523_s26, %s3523_s26, %s3529_s20  }
  0x39   : > { %s3554_s16 = sshll.u32 %s2802_s9, 8  ;;  %s3555_s18 = sshll.u32 %s2928_s15, 4 }
  0x3a   : > { %s2988_s19 = scalar_lea.hbm %s3512_s4, %s3554_s16  ;;  %s371_s1 = scalar_lea.vmem [#allocation11], %s3555_s18 }
  0x3b   : > { %s378_s11 = sshll.u32 %s371_s1, 4  ;;  %s2995_s17 = sshll.u32 %s2802_s9, 4  ;;  %s2992_s11 = int_to_ptr.vmem [resolvable:$true] %s378_s11 }
  0x3c   : > { %s3556_s3 = sld [smem:[#allocation32_spill]]  ;;  %s353_s21 = scalar_lea.vmem [#allocation9], %s2928_s15 }
  0x3d   : > { %s360_s24 = sshll.u32 %s353_s21, 4  ;;  %s3528_s16 = scalar_lea.sflag [#allocation10], %s2925_s14  ;;  %s361_s24 = int_to_ptr.vmem [resolvable:$true] %s360_s24 }
  0x42   : > { %s3001_s30 = scalar_lea.hbm %s3556_s3, %s2995_s17  ;;  %s2507_s18 = scalar_lea.hbm %s3556_s3, 32 }
  0x43   : > { %s2502_s23 = scalar_lea.hbm %s3001_s30, 16  ;;  %p2508_p1 = scmp.lt.u32.totalorder %s3001_s30, %s3556_s3 }
  0x44   : > { %p2503_p10 = scmp.ne.s32.totalorder %s3001_s30, %s2502_s23  ;;  %p2509_p2 = scmp.lt.u32.totalorder %s2507_s18, %s2502_s23 }
  0x45   : > { %p2511_p4 = scmp.lt.u32.totalorder %s2502_s23, %s3001_s30 }
  0x46   : > { %p2505_p13 = pnand %p2503_p10, %p2955_p8  ;;  %p2510_p3 = por %p2509_p2, %p2508_p1 }
  0x48   : > { %p2506_p0 = pneg %p2505_p13  ;;  %p2512_p5 = por %p2511_p4, %p2510_p3 }
  0x4a   : > { %p2513_p7 = pnand %p2512_p5, %p2506_p0 }
  0x4c   : > { %2516 = shalt.err (!%p2513_p7)
}
  0x4d   : > { %s2517_s21 = scalar_lea.vmem %s361_s24, 16  ;;  %s2811_s25 = smov [#allocation9]  }
  0x4e   : > { %p2518_p9 = scmp.ne.s32.totalorder %s361_s24, %s2517_s21  ;;  %s2522_s26 = sshll.u32 %s2811_s25, 4  ;;  %s2523_s26 = int_to_ptr.vmem [resolvable:$false] %s2522_s26 }
  0x4f   : > { %s2524_s1 = scalar_lea.vmem %s2523_s26, 32  ;;  %p2525_p10 = scmp.lt.s32.totalorder %s361_s24, %s2523_s26 }
  0x50   : > { %p2520_p11 = pnand %p2518_p9, %p2955_p8  ;;  %p2526_p13 = scmp.lt.s32.totalorder %s2524_s1, %s2517_s21 }
  0x52   : > { %p2521_p12 = pneg %p2520_p11  ;;  %p2527_p6 = por %p2526_p13, %p2525_p10 }
  0x54   : > { %p2528_p1 = pnand %p2527_p6, %p2521_p12 }
  0x56   : > { %2531 = shalt.err (!%p2528_p1)
}
  0x57   : > { %p3557_p2 = scmp.ne.s32.totalorder %s3552_s22, 0  ;;  %s2063_s23 = sshll.u32 %s2928_s15, 6 }
  0x58   : > { %s2115_s13 = sshll.u32 %s2802_s9, 10  ;;  %s3558_s5 = sld [smem:[#allocation33_spill]] }
  0x59   : > { %2330 = dma.hbm_to_vmem [thread:$0]  (!%p3557_p2), %s3001_s30, 16, %s361_s24, %s3528_s16  }
  0x5a   : > { %s392_s8 = scalar_lea.vmem [#allocation12], %s2063_s23  ;;  %s3527_s21 = scalar_lea.sflag [#allocation13], %s2925_s14 }
  0x5b   : > { %s399_s29 = sshll.u32 %s392_s8, 4  ;;  %s3031_s29 = int_to_ptr.vmem [resolvable:$true] %s399_s29 }
  0x5e   : > { %s3029_s26 = scalar_lea.hbm %s3558_s5, %s2115_s13  ;;  %s2537_s25 = scalar_lea.hbm %s3558_s5, 2048 }
  0x5f   : > { %s2532_s1 = scalar_lea.hbm %s3029_s26, 1024  ;;  %p2538_p4 = scmp.lt.u32.totalorder %s3029_s26, %s3558_s5 }
  0x60   : > { %p2533_p6 = scmp.ne.s32.totalorder %s3029_s26, %s2532_s1  ;;  %p2539_p5 = scmp.lt.u32.totalorder %s2537_s25, %s2532_s1 }
  0x61   : > { %p2541_p9 = scmp.lt.u32.totalorder %s2532_s1, %s3029_s26 }
  0x62   : > { %p2535_p0 = pnand %p2533_p6, %p2955_p8  ;;  %p2540_p7 = por %p2539_p5, %p2538_p4 }
  0x64   : > { %p2536_p3 = pneg %p2535_p0  ;;  %p2542_p11 = por %p2541_p9, %p2540_p7 }
  0x66   : > { %p2543_p12 = pnand %p2542_p11, %p2536_p3 }
  0x68   : > { %2546 = shalt.err (!%p2543_p12)
}
  0x69   : > { %s2547_s23 = scalar_lea.vmem %s3031_s29, 1024  ;;  %s2812_s8 = smov [#allocation12]  }
  0x6a   : > { %p2548_p10 = scmp.ne.s32.totalorder %s3031_s29, %s2547_s23  ;;  %s2552_s30 = sshll.u32 %s2812_s8, 4  ;;  %s2553_s30 = int_to_ptr.vmem [resolvable:$false] %s2552_s30 }
  0x6b   : > { %s2554_s24 = scalar_lea.vmem %s2553_s30, 2048  ;;  %p2555_p6 = scmp.lt.s32.totalorder %s3031_s29, %s2553_s30 }
  0x6c   : > { %p2550_p13 = pnand %p2548_p10, %p2955_p8  ;;  %p2556_p0 = scmp.lt.s32.totalorder %s2554_s24, %s2547_s23 }
  0x6e   : > { %p2551_p1 = pneg %p2550_p13  ;;  %p2557_p4 = por %p2556_p0, %p2555_p6 }
  0x70   : > { %p2558_p5 = pnand %p2557_p4, %p2551_p1 }
  0x72   : > { %2561 = shalt.err (!%p2558_p5)
}
  0x73   : > { %s3559_s1 = smov 64   ;;  %s3061_s25 = sadd.s32 4294967295, %s2806_s10  }
  0x74   : > { %2336 = dma.hbm_to_vmem [thread:$0]  (!%p3557_p2), %s3029_s26, 1024, %s3031_s29, %s3527_s21, %s3559_s1, %s3559_s1, %s3529_s20  }
  0x75   : > { %p90_p3 = scmp.ne.s32.totalorder %s2790_s28, %s2786_s27  ;;  %p3532_p7 = scmp.eq.s32.totalorder %s3061_s25, 0 }
  0x76   : > { %p2052_p9 = scmp.ge.s32.totalorder %s2806_s10, 1  ;;  %p283_p11 = scmp.lt.s32.totalorder %s2806_s10, 3 }
  0x77   : > { %p3070_p12 = por %p3532_p7, %p90_p3  ;;  %s2813_s26 = smov [#allocation3]  }
  0x78   : > { %p3074_p10 = pnand %p2052_p9, %p283_p11  ;;  %s298_s29 = sshll.u32 %s2813_s26, 4  ;;  %s3078_s29 = int_to_ptr.vmem [resolvable:$true] %s298_s29 }
  0x79   : > { %s3560_s13 = scalar_select %p3070_p12, 1, 0 }
  0x7a   : > { %s3562_s18 = scalar_select %p3074_p10, 1, 0 }
  0x7b   : > { %3561 = sst [smem:[#allocation30_spill]] %s3560_s13  ;;  %p2317_p13 = pneg %p3074_p10 }
  0x7c   : > { %s3086_s8 = scalar_lea.hbm %s3510_s2, %s2995_s17  ;;  %s336_s24 = scalar_lea.vmem [#allocation8], %s2928_s15 }
  0x7d   : > { %p3090_p1 = pnand %p2317_p13, %p3532_p7  ;;  %s343_s21 = sshll.u32 %s336_s24, 4  ;;  %s3095_s21 = int_to_ptr.vmem [resolvable:$true] %s343_s21 }
  0x7e   : > { %s3101_s20 = scalar_lea.hbm %s3514_s6, %s2995_s17  ;;  %s2562_s27 = scalar_lea.hbm %s3508_s0, 256 }
  0x7f   : > { %p2563_p6 = scmp.ne.s32.totalorder %s3508_s0, %s2562_s27  ;;  %p2564_p0 = pneg %p3090_p1 }
  0x80   : > { %p2569_p3 = scmp.lt.u32.totalorder %s2562_s27, %s3508_s0 }
  0x81   : > { %p2565_p4 = pnand %p2564_p0, %p2563_p6 }
  0x83   : > { %p2566_p5 = pneg %p2565_p4 }
  0x85   : > { %p2571_p9 = pnand %p2569_p3, %p2566_p5 }
  0x87   : > { %2574 = shalt.err (!%p2571_p9)
}
  0x88   : > { %s2575_s16 = scalar_lea.vmem %s3078_s29, 256  ;;  %p2583_p12 = scmp.lt.s32.totalorder %s3078_s29, %s3078_s29 }
  0x89   : > { %p2576_p11 = scmp.ne.s32.totalorder %s3078_s29, %s2575_s16  ;;  %p2584_p10 = scmp.lt.s32.totalorder %s2575_s16, %s2575_s16 }
  0x8b   : > { %p2578_p13 = pnand %p2576_p11, %p2564_p0  ;;  %p2585_p2 = por %p2584_p10, %p2583_p12 }
  0x8d   : > { %p2579_p7 = pneg %p2578_p13 }
  0x8f   : > { %p2586_p8 = pnand %p2585_p2, %p2579_p7 }
  0x91   : > { %2589 = shalt.err (!%p2586_p8)
}
  0x92   : > { %s2814_s3 = smov 128   ;;  %s2815_s5 = smov 8  }
  0x93   : > { %2320 = dma.hbm_to_vmem [thread:$0]  (!%p3090_p1), %s3508_s0, 256, %s3078_s29, [#allocation4], %s2814_s3, %s2814_s3, %s2815_s5  }
  0x94   : > { %s2590_s26 = scalar_lea.hbm %s3086_s8, 16  ;;  %p3564_p0 = scmp.ne.s32.totalorder %s3553_s12, 0 }
  0x95   : > { %p2591_p6 = scmp.ne.s32.totalorder %s3086_s8, %s2590_s26  ;;  %s2595_s24 = scalar_lea.hbm %s3510_s2, 32 }
  0x96   : > { %p2596_p8 = scmp.lt.u32.totalorder %s3086_s8, %s3510_s2  ;;  %p2597_p7 = scmp.lt.u32.totalorder %s2595_s24, %s2590_s26 }
  0x97   : > { %p2593_p12 = pnand %p2591_p6, %p3564_p0  ;;  %p2599_p4 = scmp.lt.u32.totalorder %s2590_s26, %s3086_s8 }
  0x98   : > { %p2598_p10 = por %p2597_p7, %p2596_p8 }
  0x99   : > { %p2594_p2 = pneg %p2593_p12 }
  0x9a   : > { %p2600_p5 = por %p2599_p4, %p2598_p10 }
  0x9c   : > { %p2601_p3 = pnand %p2600_p5, %p2594_p2 }
  0x9e   : > { %2604 = shalt.err (!%p2601_p3)
}
  0x9f   : > { %s2605_s29 = scalar_lea.vmem %s3095_s21, 16  ;;  %s2816_s30 = smov [#allocation8]  }
  0xa0   : > { %p2606_p1 = scmp.ne.s32.totalorder %s3095_s21, %s2605_s29  ;;  %s2610_s3 = sshll.u32 %s2816_s30, 4  ;;  %s2611_s3 = int_to_ptr.vmem [resolvable:$false] %s2610_s3 }
  0xa1   : > { %s2612_s13 = scalar_lea.vmem %s2611_s3, 32  ;;  %p2613_p13 = scmp.lt.s32.totalorder %s3095_s21, %s2611_s3 }
  0xa2   : > { %p2608_p9 = pnand %p2606_p1, %p3564_p0  ;;  %p2614_p6 = scmp.lt.s32.totalorder %s2612_s13, %s2605_s29 }
  0xa4   : > { %p2609_p11 = pneg %p2608_p9  ;;  %p2615_p12 = por %p2614_p6, %p2613_p13 }
  0xa6   : > { %p2616_p8 = pnand %p2615_p12, %p2609_p11 }
  0xa8   : > { %2619 = shalt.err (!%p2616_p8)
}
  0xa9   : > { %p3565_p2 = scmp.ne.s32.totalorder %s3552_s22, 0  ;;  %s3566_s5 = scalar_lea.sflag [#allocation7], %s2925_s14 }
  0xaa   : > { %s2620_s9 = scalar_lea.hbm %s2988_s19, 256  ;;  %s2625_s27 = scalar_lea.hbm %s3512_s4, 512 }
  0xab   : > { %2327 = dma.hbm_to_vmem [thread:$0]  (!%p3565_p2), %s3086_s8, 16, %s3095_s21, %s3566_s5  }
  0xac   : > { %p2621_p7 = scmp.ne.s32.totalorder %s2988_s19, %s2620_s9  ;;  %p2626_p5 = scmp.lt.u32.totalorder %s2988_s19, %s3512_s4 }
  0xad   : > { %p2627_p3 = scmp.lt.u32.totalorder %s2625_s27, %s2620_s9  ;;  %p2629_p9 = scmp.lt.u32.totalorder %s2620_s9, %s2988_s19 }
  0xae   : > { %p2623_p10 = pnand %p2621_p7, %p3564_p0 }
  0xaf   : > { %p2628_p1 = por %p2627_p3, %p2626_p5 }
  0xb0   : > { %p2624_p4 = pneg %p2623_p10 }
  0xb1   : > { %p2630_p11 = por %p2629_p9, %p2628_p1 }
  0xb3   : > { %p2631_p13 = pnand %p2630_p11, %p2624_p4 }
  0xb5   : > { %2634 = shalt.err (!%p2631_p13)
}
  0xb6   : > { %s2635_s21 = scalar_lea.vmem %s2992_s11, 256  ;;  %s2817_s8 = smov [#allocation11]  }
  0xb7   : > { %p2636_p6 = scmp.ne.s32.totalorder %s2992_s11, %s2635_s21  ;;  %s2640_s16 = sshll.u32 %s2817_s8, 4  ;;  %s2641_s16 = int_to_ptr.vmem [resolvable:$false] %s2640_s16 }
  0xb8   : > { %s2642_s29 = scalar_lea.vmem %s2641_s16, 512  ;;  %p2643_p7 = scmp.lt.s32.totalorder %s2992_s11, %s2641_s16 }
  0xb9   : > { %p2638_p12 = pnand %p2636_p6, %p3564_p0  ;;  %p2644_p10 = scmp.lt.s32.totalorder %s2642_s29, %s2635_s21 }
  0xbb   : > { %p2639_p8 = pneg %p2638_p12  ;;  %p2645_p5 = por %p2644_p10, %p2643_p7 }
  0xbd   : > { %p2646_p3 = pnand %p2645_p5, %p2639_p8 }
  0xbf   : > { %2649 = shalt.err (!%p2646_p3)
}
  0xc0   : > { %s3567_s30 = smov 4   ;;  %s3568_s3 = scalar_lea.sflag [#allocation10], %s2925_s14 }
  0xc1   : > { %2333 = dma.hbm_to_vmem [thread:$0]  (!%p3565_p2), %s2988_s19, 256, %s2992_s11, %s3568_s3, %s3559_s1, %s3559_s1, %s3567_s30  }
  0xc2   : > { %s412_s13 = scalar_lea.vmem [#allocation14], %s2928_s15  ;;  %s2650_s9 = scalar_lea.hbm %s3101_s20, 16 }
  0xc3   : > { %s419_s5 = sshll.u32 %s412_s13, 4  ;;  %p2651_p4 = scmp.ne.s32.totalorder %s3101_s20, %s2650_s9  ;;  %s420_s5 = int_to_ptr.vmem [resolvable:$true] %s419_s5 }
  0xc4   : > { %s2655_s27 = scalar_lea.hbm %s3514_s6, 32  ;;  %p2656_p11 = scmp.lt.u32.totalorder %s3101_s20, %s3514_s6 }
  0xc5   : > { %p2653_p1 = pnand %p2651_p4, %p3564_p0  ;;  %p2657_p13 = scmp.lt.u32.totalorder %s2655_s27, %s2650_s9 }
  0xc6   : > { %p2659_p12 = scmp.lt.u32.totalorder %s2650_s9, %s3101_s20 }
  0xc7   : > { %p2654_p9 = pneg %p2653_p1  ;;  %p2658_p6 = por %p2657_p13, %p2656_p11 }
  0xc9   : > { %p2660_p8 = por %p2659_p12, %p2658_p6 }
  0xcb   : > { %p2661_p7 = pnand %p2660_p8, %p2654_p9 }
  0xcd   : > { %2664 = shalt.err (!%p2661_p7)
}
  0xce   : > { %s2665_s11 = scalar_lea.vmem %s420_s5, 16  ;;  %s2818_s19 = smov [#allocation14]  }
  0xcf   : > { %p2666_p10 = scmp.ne.s32.totalorder %s420_s5, %s2665_s11  ;;  %s2670_s1 = sshll.u32 %s2818_s19, 4  ;;  %s2671_s1 = int_to_ptr.vmem [resolvable:$false] %s2670_s1 }
  0xd0   : > { %s2672_s21 = scalar_lea.vmem %s2671_s1, 32  ;;  %p2673_p4 = scmp.lt.s32.totalorder %s420_s5, %s2671_s1 }
  0xd1   : > { %p2668_p5 = pnand %p2666_p10, %p3564_p0  ;;  %p2674_p1 = scmp.lt.s32.totalorder %s2672_s21, %s2665_s11 }
  0xd3   : > { %p2669_p3 = pneg %p2668_p5  ;;  %p2675_p2 = por %p2674_p1, %p2673_p4 }
  0xd5   : > { %p2676_p11 = pnand %p2675_p2, %p2669_p3 }
  0xd7   : > { %2679 = shalt.err (!%p2676_p11)
}
  0xd8   : > { %p3569_p13 = scmp.ne.s32.totalorder %s3552_s22, 0  ;;  %s3570_s8 = scalar_lea.sflag [#allocation13], %s2925_s14 }
  0xd9   : > { %s3197_s30 = scalar_lea.hbm %s3515_s7, %s2995_s17  ;;  %s429_s3 = scalar_lea.vmem [#allocation15], %s2928_s15 }
  0xda   : > { %2339 = dma.hbm_to_vmem [thread:$0]  (!%p3569_p13), %s3101_s20, 16, %s420_s5, %s3570_s8  }
  0xdb   : > { %s436_s13 = sshll.u32 %s429_s3, 4  ;;  %s427_s9 = scalar_lea.sflag [#allocation16], %s2928_s15  ;;  %s437_s13 = int_to_ptr.vmem [resolvable:$true] %s436_s13 }
  0xdc   : > { %s2680_s14 = scalar_lea.hbm %s3197_s30, 16  ;;  %s2685_s5 = scalar_lea.hbm %s3515_s7, 32 }
  0xdd   : > { %p2681_p2 = scmp.ne.s32.totalorder %s3197_s30, %s2680_s14  ;;  %p2686_p12 = scmp.lt.u32.totalorder %s3197_s30, %s3515_s7 }
  0xde   : > { %p2687_p8 = scmp.lt.u32.totalorder %s2685_s5, %s2680_s14  ;;  %p2689_p10 = scmp.lt.u32.totalorder %s2680_s14, %s3197_s30 }
  0xdf   : > { %p2683_p9 = pnand %p2681_p2, %p3564_p0 }
  0xe0   : > { %p2688_p7 = por %p2687_p8, %p2686_p12 }
  0xe1   : > { %p2684_p6 = pneg %p2683_p9 }
  0xe2   : > { %p2690_p5 = por %p2689_p10, %p2688_p7 }
  0xe4   : > { %p2691_p3 = pnand %p2690_p5, %p2684_p6 }
  0xe6   : > { %2694 = shalt.err (!%p2691_p3)
}
  0xe7   : > { %s2695_s15 = scalar_lea.vmem %s437_s13, 16  ;;  %s2819_s27 = smov [#allocation15]  }
  0xe8   : > { %p2696_p4 = scmp.ne.s32.totalorder %s437_s13, %s2695_s15  ;;  %s2700_s23 = sshll.u32 %s2819_s27, 4  ;;  %s2701_s23 = int_to_ptr.vmem [resolvable:$false] %s2700_s23 }
  0xe9   : > { %s2702_s24 = scalar_lea.vmem %s2701_s23, 32  ;;  %p2703_p2 = scmp.lt.s32.totalorder %s437_s13, %s2701_s23 }
  0xea   : > { %p2698_p1 = pnand %p2696_p4, %p3564_p0  ;;  %p2704_p9 = scmp.lt.s32.totalorder %s2702_s24, %s2695_s15 }
  0xec   : > { %p2699_p11 = pneg %p2698_p1  ;;  %p2705_p13 = por %p2704_p9, %p2703_p2 }
  0xee   : > { %p2706_p8 = pnand %p2705_p13, %p2699_p11 }
  0xf0   : > { %2709 = shalt.err (!%p2706_p8)
}
  0xf1   : > { %p3571_p12 = scmp.ne.s32.totalorder %s3552_s22, 0  ;;  %p3572_p6 = scmp.ne.s32.totalorder %s3562_s18, 0 }
  0xf2   : > { %p3573_p7 = scmp.eq.s32.totalorder (!%p3572_p6), %s3061_s25, 0 }
  0xf3   : > { %2342 = dma.hbm_to_vmem [thread:$0]  (!%p3571_p12), %s3197_s30, 16, %s437_s13, %s427_s9  }
  0xf4   : > { %445 = sbr.rel (%p3572_p6) target bundleno = 4205 (0x106d), region = 52 }
  0xfb   : > { %2761 = dma.done.wait (%p3573_p7), [#allocation4], 256   ;;  %p3574_p0 = pmov %p3573_p7 }
  0xfc   : > { %s3575_s12 = sld [smem:[#allocation30_spill]]  ;;  %s451_s11 = sand.u32 1, %s3061_s25  }
  0xfd   : > { %2763 = vsyncadd (%p3574_p0), [#allocation4], 4294967040  ;;  %s3226_s19 = sand.u32 1, %s2790_s28   ;;  %s452_s22 = scalar_lea.sflag [#allocation7], %s451_s11 }
  0xfe   : > { %s2070_s1 = sshll.u32 %s3226_s19, 4 }
  0xff   : > { %s3229_s21 = scalar_lea.vmem [#allocation6], %s2070_s1 }
 0x102   : > { %p3576_p13 = scmp.ne.s32.totalorder %s3575_s12, 0 }
 0x104   : > { %2765 = dma.done.wait (%p3576_p13), %s452_s22, 272  }
 0x105   : > { %2767 = vsyncadd (%p3576_p13), %s452_s22, 4294967024  ;;  %s463_s18 = scalar_lea.vmem [#allocation8], %s3226_s19  ;;  %s469_s8 = scalar_lea.sflag [#allocation10], %s451_s11 }
 0x106   : > { %s471_s16 = scalar_lea.vmem [#allocation9], %s3226_s19 }
 0x107   : > { %2769 = dma.done.wait (%p3576_p13), %s469_s8, 272  }
 0x108   : > { %2771 = vsyncadd (%p3576_p13), %s469_s8, 4294967024  ;;  %s2072_s29 = sshll.u32 %s3226_s19, 6  ;;  %s3242_s30 = scalar_lea.vmem [#allocation11], %s2070_s1 }
 0x109   : > { %s486_s3 = scalar_lea.sflag [#allocation13], %s451_s11  ;;  %s3244_s13 = scalar_lea.vmem [#allocation12], %s2072_s29 }
 0x10a   : > { %2773 = dma.done.wait (%p3576_p13), %s486_s3, 1040  }
 0x10b   : > { %2775 = vsyncadd (%p3576_p13), %s486_s3, 4294966256  ;;  %s497_s9 = scalar_lea.vmem [#allocation14], %s3226_s19  ;;  %s503_s14 = scalar_lea.sflag [#allocation16], %s3226_s19 }
 0x10c   : > { %s505_s10 = scalar_lea.vmem [#allocation15], %s3226_s19 }
 0x10d   : > { %2777 = dma.done.wait (%p3576_p13), %s503_s14, 16  }
 0x10e   : > { %2779 = vsyncadd (%p3576_p13), %s503_s14, 4294967280  ;;  %s3577_s20 = sld [smem:[#allocation25_spill]] }
 0x114   : > { %p2073_p10 = scmp.ne.s32.totalorder %s3577_s20, 0 }
 0x115   : > { %v566_v0 = vld [vmem:[#allocation3] sm:$0xff] (!%p2073_p10)  ;;  %vm568_vm0 = vcmask (!%p2073_p10), 261120   ;;  %v567_v1 = vld [vmem:[#allocation3 + $0x8] sm:$0xff] (!%p2073_p10)  ;;  %v571_v2 = vlaneseq (!%p2073_p10)  ;;  %vm578_vm1 = vcmask (!%p2073_p10), 64512   ;;  %v2820_v5 = vmov (!%p2073_p10), 0.0  }
 0x116   : > { %565 = sbr.rel (%p2073_p10) target bundleno = 285 (0x11d), region = 88  ;;  %569 = vst.msk [vmem:[#allocation17] sm:$0xff] (!%p2073_p10), %vm568_vm0, %v566_v0  ;;  %570 = vst.msk [vmem:[#allocation17 + $0x8] sm:$0xff] (!%p2073_p10), %vm568_vm0, %v567_v1 }
 0x117   : > { %v572_v3 = vshrl.u32 (!%p2073_p10), %v571_v2, 7  ;;  %v574_v4 = vand.u32 (!%p2073_p10), 127, %v571_v2 }
 0x119   : > { %vm575_vm2 = vcmp.ge.s32.totalorder (!%p2073_p10), %v572_v3, %v574_v4 }
 0x11a   : > { %v2074_v6 = vsel (!%p2073_p10), %vm575_vm2, 1.0, %v2820_v5 }
 0x11b   : > { %579 = vst.msk [vmem:[#allocation2] sm:$0xff] (!%p2073_p10), %vm578_vm1, %v2074_v6 }
 0x11d PF: > { %v2420_v7 = vld [vmem:[%s3229_s21] sm:$0xff]   ;;  %v2821_v8 = vmov 0.0   ;;  %v2421_v9 = vld [vmem:[%s3229_s21 + $0x8] sm:$0xff]   ;;  %vm2822_vm3 = vmmov 0   ;;  %vm599_vm4 = vcmask 261120   ;;  %s2823_s5 = smov 96  }
 0x11e   : > { %2163 = vmatprep.subr.bf16.mxu1 %v2821_v8  ;;  %2189 = vmatprep.subr.bf16.mxu0 %v2821_v8  ;;  %v3264_v10 = vld [vmem:[#allocation17] sm:$0xff]  ;;  %v3266_v11 = vld [vmem:[#allocation17 + $0x8] sm:$0xff]  ;;  %vm650_vm5 = vcmask 64512   ;;  %s2824_s26 = smov 64   ;;  %s2825_s17 = smov 88   ;;  %vm781_vm8 = vcmask 1043456  }
 0x11f   : > { %2164 = vmatpush3.bf16.msra.mxu1 %v2420_v7  ;;  %2167 = vmatprep.mubr.msk.bf16.mxu1 %vm2822_vm3, %v2821_v8  ;;  %v582_v12 = vpack.c.bf16 %v3266_v11, %v3264_v10  ;;  %s2826_s15 = smov 120   ;;  %s2827_s27 = smov 56   ;;  %vm1580_vm15 = vcmask 195584   ;;  %vm1577_vm0 = vcmask 130048  }
 0x120   : > { %2165 = vmatprep.subr.bf16.mxu1 %v2821_v8  ;;  %2191 = vmatprep.mubr.msk.bf16.mxu0 %vm2822_vm3, %v2821_v8  ;;  %s2828_s23 = smov 80   ;;  %s2829_s24 = smov 112  }
 0x121   : > { %s2830_s12 = smov 48   ;;  %s2831_s11 = smov 72  }
 0x122   : > { %v3295_v23 = vld [vmem:[#allocation2] sm:$0xff]  ;;  %s2832_s1 = smov 104   ;;  %s2833_s22 = smov 40  }
 0x123   : > { %2166 = vmatpush3.bf16.msra.mxu1 %v2421_v9  ;;  %s2834_s21 = smov 8   ;;  %s2835_s8 = smov 16  }
 0x124   : > { %2171 = vmatprep.subr.bf16.mxu1 %v2821_v8  ;;  %s2836_s29 = smov 24   ;;  %p2346_p5 = scmp.eq.s32.totalorder %s3061_s25, 1 }
 0x126   : > { %2168 = vmatmul.mubr.msk.bf16.vlgmr.msra.gmra.mrb[0].mxu1 %vm599_vm4, %v582_v12 }
 0x127   : > { %2173 = vmatprep.mubr.msk.bf16.mxu1 %vm2822_vm3, %v2821_v8 }
 0x1f9   : > { %v637_v13 = vpop.f32.mrb[0].mxu1 }
 0x1fa   : > { %v3277_v14 = vpack.c.bf16 %v637_v13, %v637_v13  ;;  %v2169_v15 = vpop.f32.mrb[1].mxu1 }
 0x1fb   : > { %v640_v16 = vpop.f32.mrb[2].mxu1 }
 0x1fc   : > { %648 = vrot.lane.b32.xlu0 %v3277_v14, %s2823_s5  ;;  %v2170_v17 = vpop.f32.mrb[3].mxu1  ;;  %v3280_v18 = vpack.c.bf16 %v640_v16, %v640_v16 }
 0x200   : > { %698 = vrot.lane.b32.xlu0 %v3280_v18, %s2823_s5 }
 0x26e   : > { %v649_v19 = vpop.permute.xlu0 %648 }
 0x26f   : > { %v655_v20 = vsel %vm650_vm5, %v649_v19, 0 }
 0x270   : > { %2172 = vmatpush3.bf16.xpose.msra.mxu1 %v655_v20 }
 0x271   : > { %2177 = vmatprep.subr.bf16.mxu1 %v2821_v8 }
 0x272   : > { %v699_v21 = vpop.permute.xlu0 %698 }
 0x273   : > { %v704_v22 = vsel %vm650_vm5, %v699_v21, 0 }
 0x277   : > { %2174 = vmatmul.mubr.msk.bf16.vlgmr.msra.gmra.mrb[4].mxu1 %vm650_vm5, %v3277_v14 }
 0x278   : > { %2178 = vmatpush3.bf16.xpose.msra.mxu1 %v704_v22  ;;  %2179 = vmatprep.mubr.msk.bf16.mxu1 %vm2822_vm3, %v2821_v8 }
 0x279   : > { %2183 = vmatprep.subr.bf16.mxu1 %v2821_v8 }
 0x27f   : > { %2180 = vmatmul.mubr.msk.bf16.vlgmr.msra.gmra.mrb[8].mxu1 %vm650_vm5, %v3280_v18 }
 0x280   : > { %2185 = vmatprep.mubr.msk.bf16.mxu1 %vm2822_vm3, %v2821_v8 }
 0x34a   : > { %v691_v24 = vpop.f32.mrb[4].mxu1 }
 0x34b   : > { %v746_v25 = vmul.f32 %v691_v24, %v3295_v23  ;;  %v2175_v26 = vpop.f32.mrb[5].mxu1 }
 0x34c   : > { %v694_v27 = vpop.f32.mrb[6].mxu1 }
 0x34d   : > { %v2176_v28 = vpop.f32.mrb[7].mxu1  ;;  %vm748_vm6 = vcmp.eq.f32.partialorder %v746_v25, 0.0 }
 0x34e   : > { %v750_v29 = vsel %vm748_vm6, -inf, %v746_v25 }
 0x34f   : > { %v752_v30 = vsel %vm650_vm5, %v750_v29, -inf }
 0x350   : > { %753 = vmax.xlane.f32.xlu1 %v752_v30 }
 0x352   : > { %v740_v31 = vpop.f32.mrb[8].mxu1 }
 0x353   : > { %v747_v32 = vmul.f32 %v740_v31, %v3295_v23  ;;  %v2181_v33 = vpop.f32.mrb[9].mxu1 }
 0x354   : > { %v743_v34 = vpop.f32.mrb[10].mxu1 }
 0x355   : > { %v2182_v35 = vpop.f32.mrb[11].mxu1  ;;  %vm749_vm7 = vcmp.eq.f32.partialorder %v747_v32, 0.0 }
 0x356   : > { %v751_v36 = vsel %vm749_vm7, -inf, %v747_v32 }
 0x357   : > { %v755_v37 = vsel %vm650_vm5, %v751_v36, -inf }
 0x358   : > { %756 = vmax.xlane.f32.xlu1 %v755_v37 }
 0x369   : > { %776 = vrot.lane.b32.xlu1 %v3277_v14, %s2824_s26 }
 0x36d   : > { %825 = vrot.lane.b32.xlu1 %v3280_v18, %s2824_s26 }
 0x371   : > { %875 = vrot.lane.b32.xlu1 %v3277_v14, %s2825_s17 }
 0x3dd   : > { %v754_v38 = vpop.xlane.xlu1 %753 }
 0x3de   : > { %v758_v39 = vsub.f32 %v750_v29, %v754_v38 }
 0x3e0   : > { %v760_v40 = vmul.f32 1.442695, %v758_v39 }
 0x3e2   : > { %2432 = vpow2.f32 %v760_v40 }
 0x3e5   : > { %v757_v41 = vpop.xlane.xlu1 %756 }
 0x3e6   : > { %v759_v42 = vsub.f32 %v751_v36, %v757_v41 }
 0x3e8   : > { %v762_v43 = vmul.f32 1.442695, %v759_v42 }
 0x3e9   : > { %v777_v44 = vpop.permute.xlu1 %776 }
 0x3ea   : > { %2434 = vpow2.f32 %v762_v43  ;;  %v783_v45 = vsel %vm781_vm8, %v777_v44, 0 }
 0x3eb   : > { %2184 = vmatpush3.bf16.msra.mxu1 %v783_v45 }
 0x3ec   : > { %v2433_v46 = vpop.eup %2432  ;;  %2195 = vmatprep.subr.bf16.mxu1 %v2821_v8 }
 0x3ed   : > { %v826_v47 = vpop.permute.xlu1 %825  ;;  %v764_v48 = vsel %vm650_vm5, %v2433_v46, 0.0 }
 0x3ee   : > { %765 = vadd.xlane.f32.xlu0 %v764_v48  ;;  %v831_v49 = vsel %vm781_vm8, %v826_v47, 0 }
 0x3ef   : > { %2190 = vmatpush3.bf16.msra.mxu0 %v831_v49 }
 0x3f0   : > { %2201 = vmatprep.subr.bf16.mxu0 %v2821_v8 }
 0x3f1   : > { %v876_v53 = vpop.permute.xlu1 %875 }
 0x3f2   : > { %v881_v58 = vsel %vm650_vm5, %v876_v53, 0 }
 0x3f4   : > { %v2435_v50 = vpop.eup %2434 }
 0x3f5   : > { %v767_v51 = vsel %vm650_vm5, %v2435_v50, 0.0 }
 0x3f6   : > { %768 = vadd.xlane.f32.xlu1 %v767_v51 }
 0x404   : > { %873 = vrot.lane.b32.xlu0 %v3277_v14, %s2826_s15 }
 0x407   : > { %925 = vrot.lane.b32.xlu1 %v3280_v18, %s2825_s17 }
 0x40b   : > { %923 = vrot.lane.b32.xlu1 %v3280_v18, %s2826_s15 }
 0x47b   : > { %v766_v52 = vpop.xlane.xlu0 %765 }
 0x47c   : > { %2436 = vrcp.f32 %v766_v52 }
 0x47f   : > { %v874_v63 = vpop.permute.xlu0 %873 }
 0x483   : > { %v769_v54 = vpop.xlane.xlu1 %768 }
 0x484   : > { %2438 = vrcp.f32 %v769_v54 }
 0x486   : > { %v2437_v55 = vpop.eup %2436 }
 0x487   : > { %v771_v56 = vmul.f32 %v2437_v55, %v2433_v46  ;;  %v926_v61 = vpop.permute.xlu1 %925 }
 0x488   : > { %v931_v0 = vsel %vm650_vm5, %v926_v61, 0 }
 0x489   : > { %v774_v57 = vpack.c.bf16 %v771_v56, %v771_v56 }
 0x48b   : > { %2186 = vmatmul.mubr.msk.bf16.vlgmr.msra.gmra.mrb[12].mxu1 %vm650_vm5, %v774_v57  ;;  %v924_v1 = vpop.permute.xlu1 %923 }
 0x48c   : > { %2196 = vmatpush3.bf16.xpose.msra.mxu1 %v881_v58  ;;  %2197 = vmatprep.mubr.msk.bf16.mxu1 %vm2822_vm3, %v2821_v8 }
 0x48d   : > { %2207 = vmatprep.subr.bf16.mxu1 %v2821_v8 }
 0x48e   : > { %v2439_v59 = vpop.eup %2438 }
 0x48f   : > { %v773_v60 = vmul.f32 %v2439_v59, %v2435_v50 }
 0x491   : > { %v775_v62 = vpack.c.bf16 %v773_v60, %v773_v60 }
 0x493   : > { %2192 = vmatmul.mubr.msk.bf16.vlgmr.msra.gmra.mrb[0].mxu0 %vm650_vm5, %v775_v62  ;;  %2198 = vmatmul.mubr.msk.bf16.vlgmr.msra.gmra.mrb[16].mxu1 %vm650_vm5, %v874_v63 }
 0x494   : > { %2202 = vmatpush3.bf16.xpose.msra.mxu0 %v931_v0  ;;  %2203 = vmatprep.mubr.msk.bf16.mxu0 %vm2822_vm3, %v2821_v8 }
 0x495   : > { %2213 = vmatprep.subr.bf16.mxu0 %v2821_v8  ;;  %2209 = vmatprep.mubr.msk.bf16.mxu1 %vm2822_vm3, %v2821_v8 }
 0x49b   : > { %2204 = vmatmul.mubr.msk.bf16.vlgmr.msra.gmra.mrb[4].mxu0 %vm650_vm5, %v924_v1 }
 0x49c   : > { %2215 = vmatprep.mubr.msk.bf16.mxu0 %vm2822_vm3, %v2821_v8 }
 0x55e   : > { %v3329_v2 = vpop.f32.mrb[12].mxu1 }
 0x55f   : > { %v2187_v3 = vpop.f32.mrb[13].mxu1 }
 0x560   : > { %v822_v4 = vpop.f32.mrb[14].mxu1 }
 0x561   : > { %v2188_v5 = vpop.f32.mrb[15].mxu1 }
 0x566   : > { %v3331_v6 = vpop.f32.mrb[0].mxu0  ;;  %v917_v7 = vpop.f32.mrb[16].mxu1 }
 0x567   : > { %v973_v9 = vmul.f32 %v917_v7, %v3295_v23  ;;  %v2193_v12 = vpop.f32.mrb[1].mxu0  ;;  %v2199_v13 = vpop.f32.mrb[17].mxu1 }
 0x568   : > { %v870_v15 = vpop.f32.mrb[2].mxu0  ;;  %v920_v16 = vpop.f32.mrb[18].mxu1 }
 0x569   : > { %v2194_v17 = vpop.f32.mrb[3].mxu0  ;;  %v2200_v19 = vpop.f32.mrb[19].mxu1  ;;  %vm975_vm9 = vcmp.eq.f32.partialorder %v973_v9, 0.0 }
 0x56a   : > { %v977_v20 = vsel %vm975_vm9, -inf, %v973_v9 }
 0x56b   : > { %v979_v21 = vsel %vm650_vm5, %v977_v20, -inf }
 0x56c   : > { %980 = vmax.xlane.f32.xlu1 %v979_v21 }
 0x56e   : > { %v967_v22 = vpop.f32.mrb[4].mxu0 }
 0x56f   : > { %v974_v24 = vmul.f32 %v967_v22, %v3295_v23  ;;  %v2205_v25 = vpop.f32.mrb[5].mxu0 }
 0x570   : > { %v970_v26 = vpop.f32.mrb[6].mxu0 }
 0x571   : > { %v2206_v27 = vpop.f32.mrb[7].mxu0  ;;  %vm976_vm10 = vcmp.eq.f32.partialorder %v974_v24, 0.0 }
 0x572   : > { %v978_v28 = vsel %vm976_vm10, -inf, %v974_v24 }
 0x573   : > { %v982_v29 = vsel %vm650_vm5, %v978_v28, -inf }
 0x574   : > { %983 = vmax.xlane.f32.xlu0 %v982_v29 }
 0x57d   : > { %1003 = vrot.lane.b32.xlu1 %v3277_v14, %s2827_s27 }
 0x581   : > { %1101 = vrot.lane.b32.xlu1 %v3277_v14, %s2828_s23 }
 0x58a   : > { %1051 = vrot.lane.b32.xlu0 %v3280_v18, %s2827_s27 }
 0x58e   : > { %1099 = vrot.lane.b32.xlu0 %v3277_v14, %s2829_s24 }
 0x5f9   : > { %v981_v30 = vpop.xlane.xlu1 %980 }
 0x5fa   : > { %v985_v31 = vsub.f32 %v977_v20, %v981_v30 }
 0x5fc   : > { %v987_v32 = vmul.f32 1.442695, %v985_v31 }
 0x5fd   : > { %v1004_v33 = vpop.permute.xlu1 %1003 }
 0x5fe   : > { %2440 = vpow2.f32 %v987_v32  ;;  %v1009_v34 = vsel %vm781_vm8, %v1004_v33, 0 }
 0x5ff   : > { %2208 = vmatpush3.bf16.msra.mxu1 %v1009_v34 }
 0x600   : > { %2219 = vmatprep.subr.bf16.mxu1 %v2821_v8 }
 0x601   : > { %v984_v35 = vpop.xlane.xlu0 %983  ;;  %v1102_v44 = vpop.permute.xlu1 %1101 }
 0x602   : > { %v986_v36 = vsub.f32 %v978_v28, %v984_v35  ;;  %v1107_v50 = vsel %vm650_vm5, %v1102_v44, 0 }
 0x604   : > { %v989_v37 = vmul.f32 1.442695, %v986_v36 }
 0x605   : > { %v1052_v38 = vpop.permute.xlu0 %1051 }
 0x606   : > { %2442 = vpow2.f32 %v989_v37  ;;  %v1057_v39 = vsel %vm781_vm8, %v1052_v38, 0 }
 0x607   : > { %2214 = vmatpush3.bf16.msra.mxu0 %v1057_v39 }
 0x608   : > { %v2441_v40 = vpop.eup %2440  ;;  %2225 = vmatprep.subr.bf16.mxu0 %v2821_v8 }
 0x609   : > { %v991_v41 = vsel %vm650_vm5, %v2441_v40, 0.0  ;;  %v1100_v55 = vpop.permute.xlu0 %1099 }
 0x60a   : > { %992 = vadd.xlane.f32.xlu1 %v991_v41 }
 0x610   : > { %v2443_v42 = vpop.eup %2442 }
 0x611   : > { %v994_v43 = vsel %vm650_vm5, %v2443_v42, 0.0 }
 0x612   : > { %995 = vadd.xlane.f32.xlu1 %v994_v43 }
 0x623   : > { %1151 = vrot.lane.b32.xlu1 %v3280_v18, %s2828_s23 }
 0x627   : > { %1149 = vrot.lane.b32.xlu1 %v3280_v18, %s2829_s24 }
 0x697   : > { %v993_v45 = vpop.xlane.xlu1 %992 }
 0x698   : > { %2444 = vrcp.f32 %v993_v45 }
 0x69f   : > { %v996_v46 = vpop.xlane.xlu1 %995 }
 0x6a0   : > { %2446 = vrcp.f32 %v996_v46 }
 0x6a2   : > { %v2445_v47 = vpop.eup %2444 }
 0x6a3   : > { %v998_v48 = vmul.f32 %v2445_v47, %v2441_v40  ;;  %v1152_v53 = vpop.permute.xlu1 %1151 }
 0x6a4   : > { %v1157_v56 = vsel %vm650_vm5, %v1152_v53, 0 }
 0x6a5   : > { %v1001_v49 = vpack.c.bf16 %v998_v48, %v998_v48 }
 0x6a7   : > { %2210 = vmatmul.mubr.msk.bf16.vlgmr.msra.gmra.mrb[20].mxu1 %vm650_vm5, %v1001_v49  ;;  %v1150_v57 = vpop.permute.xlu1 %1149 }
 0x6a8   : > { %2220 = vmatpush3.bf16.xpose.msra.mxu1 %v1107_v50  ;;  %2221 = vmatprep.mubr.msk.bf16.mxu1 %vm2822_vm3, %v2821_v8 }
 0x6a9   : > { %2231 = vmatprep.subr.bf16.mxu1 %v2821_v8 }
 0x6aa   : > { %v2447_v51 = vpop.eup %2446 }
 0x6ab   : > { %v1000_v52 = vmul.f32 %v2447_v51, %v2443_v42 }
 0x6ad   : > { %v1002_v54 = vpack.c.bf16 %v1000_v52, %v1000_v52 }
 0x6af   : > { %2216 = vmatmul.mubr.msk.bf16.vlgmr.msra.gmra.mrb[8].mxu0 %vm650_vm5, %v1002_v54  ;;  %2222 = vmatmul.mubr.msk.bf16.vlgmr.msra.gmra.mrb[24].mxu1 %vm650_vm5, %v1100_v55 }
 0x6b0   : > { %2226 = vmatpush3.bf16.xpose.msra.mxu0 %v1157_v56  ;;  %2227 = vmatprep.mubr.msk.bf16.mxu0 %vm2822_vm3, %v2821_v8 }
 0x6b1   : > { %2237 = vmatprep.subr.bf16.mxu0 %v2821_v8  ;;  %2233 = vmatprep.mubr.msk.bf16.mxu1 %vm2822_vm3, %v2821_v8 }
 0x6b7   : > { %2228 = vmatmul.mubr.msk.bf16.vlgmr.msra.gmra.mrb[12].mxu0 %vm650_vm5, %v1150_v57 }
 0x6b8   : > { %2239 = vmatprep.mubr.msk.bf16.mxu0 %vm2822_vm3, %v2821_v8 }
 0x77a   : > { %v3365_v58 = vpop.f32.mrb[20].mxu1 }
 0x77b   : > { %v2211_v59 = vpop.f32.mrb[21].mxu1 }
 0x77c   : > { %v1048_v60 = vpop.f32.mrb[22].mxu1 }
 0x77d   : > { %v2212_v61 = vpop.f32.mrb[23].mxu1 }
 0x782   : > { %v3367_v62 = vpop.f32.mrb[8].mxu0  ;;  %v1143_v63 = vpop.f32.mrb[24].mxu1 }
 0x783   : > { %v1199_v0 = vmul.f32 %v1143_v63, %v3295_v23  ;;  %v2217_v1 = vpop.f32.mrb[9].mxu0  ;;  %v2223_v3 = vpop.f32.mrb[25].mxu1 }
 0x784   : > { %v1096_v4 = vpop.f32.mrb[10].mxu0  ;;  %v1146_v5 = vpop.f32.mrb[26].mxu1 }
 0x785   : > { %v2218_v7 = vpop.f32.mrb[11].mxu0  ;;  %v2224_v9 = vpop.f32.mrb[27].mxu1  ;;  %vm1201_vm11 = vcmp.eq.f32.partialorder %v1199_v0, 0.0 }
 0x786   : > { %v1203_v12 = vsel %vm1201_vm11, -inf, %v1199_v0 }
 0x787   : > { %v1205_v13 = vsel %vm650_vm5, %v1203_v12, -inf }
 0x788   : > { %1206 = vmax.xlane.f32.xlu0 %v1205_v13 }
 0x78a   : > { %v1193_v15 = vpop.f32.mrb[12].mxu0 }
 0x78b   : > { %v1200_v16 = vmul.f32 %v1193_v15, %v3295_v23  ;;  %v2229_v17 = vpop.f32.mrb[13].mxu0 }
 0x78c   : > { %v1196_v19 = vpop.f32.mrb[14].mxu0 }
 0x78d   : > { %v2230_v20 = vpop.f32.mrb[15].mxu0  ;;  %vm1202_vm12 = vcmp.eq.f32.partialorder %v1200_v16, 0.0 }
 0x78e   : > { %v1204_v21 = vsel %vm1202_vm12, -inf, %v1200_v16 }
 0x78f   : > { %v1208_v22 = vsel %vm650_vm5, %v1204_v21, -inf }
 0x790   : > { %1209 = vmax.xlane.f32.xlu1 %v1208_v22 }
 0x7a1   : > { %1229 = vrot.lane.b32.xlu1 %v3277_v14, %s2830_s12 }
 0x7a5   : > { %1327 = vrot.lane.b32.xlu1 %v3277_v14, %s2831_s11 }
 0x7a9   : > { %1377 = vrot.lane.b32.xlu1 %v3280_v18, %s2831_s11 }
 0x7ad   : > { %1375 = vrot.lane.b32.xlu1 %v3280_v18, %s2832_s1 }
 0x815   : > { %v1207_v24 = vpop.xlane.xlu0 %1206 }
 0x816   : > { %v1211_v25 = vsub.f32 %v1203_v12, %v1207_v24 }
 0x818   : > { %v1213_v26 = vmul.f32 1.442695, %v1211_v25 }
 0x81a   : > { %2448 = vpow2.f32 %v1213_v26 }
 0x81d   : > { %v1210_v27 = vpop.xlane.xlu1 %1209 }
 0x81e   : > { %v1212_v28 = vsub.f32 %v1204_v21, %v1210_v27 }
 0x820   : > { %v1215_v29 = vmul.f32 1.442695, %v1212_v28 }
 0x821   : > { %v1230_v30 = vpop.permute.xlu1 %1229 }
 0x822   : > { %2450 = vpow2.f32 %v1215_v29  ;;  %v1235_v31 = vsel %vm781_vm8, %v1230_v30, 0 }
 0x823   : > { %2232 = vmatpush3.bf16.msra.mxu1 %v1235_v31 }
 0x824   : > { %v2449_v32 = vpop.eup %2448  ;;  %2243 = vmatprep.subr.bf16.mxu1 %v2821_v8 }
 0x825   : > { %v1217_v33 = vsel %vm650_vm5, %v2449_v32, 0.0  ;;  %v1328_v41 = vpop.permute.xlu1 %1327 }
 0x826   : > { %1218 = vadd.xlane.f32.xlu0 %v1217_v33  ;;  %v1333_v44 = vsel %vm650_vm5, %v1328_v41, 0 }
 0x829   : > { %v1378_v47 = vpop.permute.xlu1 %1377 }
 0x82a   : > { %v1383_v50 = vsel %vm650_vm5, %v1378_v47, 0 }
 0x82c   : > { %v2451_v34 = vpop.eup %2450 }
 0x82d   : > { %v1220_v35 = vsel %vm650_vm5, %v2451_v34, 0.0  ;;  %v1376_v51 = vpop.permute.xlu1 %1375 }
 0x82e   : > { %1221 = vadd.xlane.f32.xlu0 %v1220_v35 }
 0x844   : > { %1277 = vrot.lane.b32.xlu0 %v3280_v18, %s2830_s12 }
 0x848   : > { %1325 = vrot.lane.b32.xlu0 %v3277_v14, %s2832_s1 }
 0x8b3   : > { %v1219_v36 = vpop.xlane.xlu0 %1218 }
 0x8b4   : > { %2452 = vrcp.f32 %v1219_v36 }
 0x8bb   : > { %v1222_v37 = vpop.xlane.xlu0 %1221 }
 0x8bc   : > { %2454 = vrcp.f32 %v1222_v37 }
 0x8be   : > { %v2453_v38 = vpop.eup %2452 }
 0x8bf   : > { %v1224_v39 = vmul.f32 %v2453_v38, %v2449_v32  ;;  %v1278_v40 = vpop.permute.xlu0 %1277 }
 0x8c0   : > { %v1283_v42 = vsel %vm781_vm8, %v1278_v40, 0 }
 0x8c1   : > { %2238 = vmatpush3.bf16.msra.mxu0 %v1283_v42  ;;  %v1227_v43 = vpack.c.bf16 %v1224_v39, %v1224_v39 }
 0x8c2   : > { %2249 = vmatprep.subr.bf16.mxu0 %v2821_v8 }
 0x8c3   : > { %2234 = vmatmul.mubr.msk.bf16.vlgmr.msra.gmra.mrb[28].mxu1 %vm650_vm5, %v1227_v43  ;;  %v1326_v49 = vpop.permute.xlu0 %1325 }
 0x8c4   : > { %2244 = vmatpush3.bf16.xpose.msra.mxu1 %v1333_v44  ;;  %2245 = vmatprep.mubr.msk.bf16.mxu1 %vm2822_vm3, %v2821_v8 }
 0x8c5   : > { %2255 = vmatprep.subr.bf16.mxu1 %v2821_v8 }
 0x8c6   : > { %v2455_v45 = vpop.eup %2454 }
 0x8c7   : > { %v1226_v46 = vmul.f32 %v2455_v45, %v2451_v34 }
 0x8c9   : > { %v1228_v48 = vpack.c.bf16 %v1226_v46, %v1226_v46 }
 0x8cb   : > { %2240 = vmatmul.mubr.msk.bf16.vlgmr.msra.gmra.mrb[16].mxu0 %vm650_vm5, %v1228_v48  ;;  %2246 = vmatmul.mubr.msk.bf16.vlgmr.msra.gmra.mrb[32].mxu1 %vm650_vm5, %v1326_v49 }
 0x8cc   : > { %2250 = vmatpush3.bf16.xpose.msra.mxu0 %v1383_v50  ;;  %2251 = vmatprep.mubr.msk.bf16.mxu0 %vm2822_vm3, %v2821_v8 }
 0x8cd   : > { %2261 = vmatprep.subr.bf16.mxu0 %v2821_v8  ;;  %2257 = vmatprep.mubr.msk.bf16.mxu1 %vm2822_vm3, %v2821_v8 }
 0x8d3   : > { %2252 = vmatmul.mubr.msk.bf16.vlgmr.msra.gmra.mrb[20].mxu0 %vm650_vm5, %v1376_v51 }
 0x8d4   : > { %2263 = vmatprep.mubr.msk.bf16.mxu0 %vm2822_vm3, %v2821_v8 }
 0x996   : > { %v1271_v52 = vpop.f32.mrb[28].mxu1 }
 0x997   : > { %v2235_v53 = vpop.f32.mrb[29].mxu1 }
 0x998   : > { %v1274_v54 = vpop.f32.mrb[30].mxu1 }
 0x999   : > { %v2236_v55 = vpop.f32.mrb[31].mxu1 }
 0x99e   : > { %v1319_v56 = vpop.f32.mrb[16].mxu0  ;;  %v1369_v57 = vpop.f32.mrb[32].mxu1 }
 0x99f   : > { %v1425_v59 = vmul.f32 %v1369_v57, %v3295_v23  ;;  %v2241_v60 = vpop.f32.mrb[17].mxu0  ;;  %v2247_v61 = vpop.f32.mrb[33].mxu1 }
 0x9a0   : > { %v1322_v63 = vpop.f32.mrb[18].mxu0  ;;  %v1372_v0 = vpop.f32.mrb[34].mxu1 }
 0x9a1   : > { %v2242_v1 = vpop.f32.mrb[19].mxu0  ;;  %v2248_v3 = vpop.f32.mrb[35].mxu1  ;;  %vm1427_vm13 = vcmp.eq.f32.partialorder %v1425_v59, 0.0 }
 0x9a2   : > { %v1429_v4 = vsel %vm1427_vm13, -inf, %v1425_v59 }
 0x9a3   : > { %v1431_v5 = vsel %vm650_vm5, %v1429_v4, -inf }
 0x9a4   : > { %1432 = vmax.xlane.f32.xlu0 %v1431_v5 }
 0x9a6   : > { %v1419_v7 = vpop.f32.mrb[20].mxu0 }
 0x9a7   : > { %v1426_v9 = vmul.f32 %v1419_v7, %v3295_v23  ;;  %v2253_v12 = vpop.f32.mrb[21].mxu0  ;;  %v2422_v7 = vld [vmem:[%s3242_s30] sm:$0xff]  }
 0x9a8   : > { %v1422_v13 = vpop.f32.mrb[22].mxu0  ;;  %v2424_v12 = vld [vmem:[%s3244_s13] sm:$0xff]  }
 0x9a9   : > { %v2254_v15 = vpop.f32.mrb[23].mxu0  ;;  %vm1428_vm14 = vcmp.eq.f32.partialorder %v1426_v9, 0.0  ;;  %v2425_v13 = vld [vmem:[%s3244_s13 + $0x8] sm:$0xff]  }
 0x9aa   : > { %v1430_v16 = vsel %vm1428_vm14, -inf, %v1426_v9  ;;  %v2423_v9 = vld [vmem:[%s3242_s30 + $0x8] sm:$0xff]   ;;  %v2426_v15 = vld [vmem:[%s3244_s13 + $0x10] sm:$0xff]  }
 0x9ab   : > { %v1434_v17 = vsel %vm650_vm5, %v1430_v16, -inf }
 0x9ac   : > { %1435 = vmax.xlane.f32.xlu1 %v1434_v17  ;;  %v2428_v17 = vld [vmem:[%s3244_s13 + $0x20] sm:$0xff]  }
 0x9bd   : > { %1455 = vrot.lane.b32.xlu1 %v3277_v14, %s2833_s22 }
 0x9c1   : > { %1553 = vrot.lane.b32.xlu1 %v3365_v58, %s2834_s21 }
 0x9c5   : > { %1555 = vrot.lane.b32.xlu1 %v3367_v62, %s2834_s21 }
 0x9c9   : > { %1563 = vrot.lane.b32.xlu1 %v1319_v56, %s2835_s8 }
 0xa31   : > { %v1433_v23 = vpop.xlane.xlu0 %1432 }
 0xa32   : > { %v1437_v19 = vsub.f32 %v1429_v4, %v1433_v23  ;;  %v2429_v23 = vld [vmem:[%s3244_s13 + $0x28] sm:$0xff]  }
 0xa34   : > { %v1439_v20 = vmul.f32 1.442695, %v1437_v19 }
 0xa36   : > { %2456 = vpow2.f32 %v1439_v20 }
 0xa39   : > { %v1436_v21 = vpop.xlane.xlu1 %1435 }
 0xa3a   : > { %v1438_v22 = vsub.f32 %v1430_v16, %v1436_v21  ;;  %v2427_v16 = vld [vmem:[%s3244_s13 + $0x18] sm:$0xff]  }
 0xa3c   : > { %v1441_v24 = vmul.f32 1.442695, %v1438_v22 }
 0xa3d   : > { %v1456_v25 = vpop.permute.xlu1 %1455 }
 0xa3e   : > { %2458 = vpow2.f32 %v1441_v24  ;;  %v1461_v14 = vsel %vm781_vm8, %v1456_v25, 0 }
 0xa3f   : > { %2256 = vmatpush3.bf16.msra.mxu1 %v1461_v14 }
 0xa40   : > { %v2457_v26 = vpop.eup %2456  ;;  %2267 = vmatprep.subr.bf16.mxu1 %v2821_v8 }
 0xa41   : > { %v1443_v58 = vsel %vm650_vm5, %v2457_v26, 0.0  ;;  %v1554_v45 = vpop.permute.xlu1 %1553 }
 0xa42   : > { %1444 = vadd.xlane.f32.xlu0 %v1443_v58  ;;  %v1575_v48 = vsel %vm650_vm5, %v3329_v2, %v1554_v45  ;;  %v2094_v58 = vld [vmem:[%s463_s18] ss:$0 sm:$0xff]  ;;  %s2837_s18 = smov [#allocation17]  }
 0xa45   : > { %v1556_v47 = vpop.permute.xlu1 %1555 }
 0xa46   : > { %v1576_v55 = vsel %vm650_vm5, %v3331_v6, %v1556_v47 }
 0xa48   : > { %v2459_v62 = vpop.eup %2458 }
 0xa49   : > { %v1446_v27 = vsel %vm650_vm5, %v2459_v62, 0.0  ;;  %v1564_v53 = vpop.permute.xlu1 %1563 }
 0xa4a   : > { %1447 = vadd.xlane.f32.xlu0 %v1446_v27  ;;  %v1579_v56 = vsel %vm1577_vm0, %v1576_v55, %v1564_v53 }
 0xa60   : > { %1503 = vrot.lane.b32.xlu0 %v3280_v18, %s2833_s22 }
 0xa64   : > { %1561 = vrot.lane.b32.xlu0 %v1271_v52, %s2835_s8 }
 0xacf   : > { %v1445_v28 = vpop.xlane.xlu0 %1444 }
 0xad0   : > { %2460 = vrcp.f32 %v1445_v28 }
 0xad7   : > { %v1448_v29 = vpop.xlane.xlu0 %1447 }
 0xad8   : > { %2462 = vrcp.f32 %v1448_v29  ;;  %v2095_v29 = vld [vmem:[%s471_s16] ss:$0 sm:$0xff]  ;;  %s1856_s16 = sshll.u32 %s2837_s18, 4  ;;  %s1857_s16 = int_to_ptr.vmem [resolvable:$true] %s1856_s16 }
 0xad9   : > { %s2710_s30 = scalar_lea.vmem %s1857_s16, 256  ;;  %p2717_p11 = scmp.lt.s32.totalorder %s1857_s16, %s1857_s16 }
 0xada   : > { %v2461_v30 = vpop.eup %2460  ;;  %p2711_p3 = scmp.ne.s32.totalorder %s1857_s16, %s2710_s30  ;;  %p2718_p2 = scmp.lt.s32.totalorder %s2710_s30, %s2710_s30 }
 0xadb   : > { %v1450_v31 = vmul.f32 %v2461_v30, %v2457_v26  ;;  %v1504_v32 = vpop.permute.xlu0 %1503 }
 0xadc   : > { %v1509_v33 = vsel %vm781_vm8, %v1504_v32, 0  ;;  %p2712_p4 = pnand %p2711_p3, %p2346_p5  ;;  %p2719_p9 = por %p2718_p2, %p2717_p11 }
 0xadd   : > { %2262 = vmatpush3.bf16.msra.mxu0 %v1509_v33  ;;  %v1453_v34 = vpack.c.bf16 %v1450_v31, %v1450_v31 }
 0xade   : > { %2275 = vmatprep.subr.bf16.mxu0 %v2821_v8  ;;  %p2713_p1 = pneg %p2712_p4 }
 0xadf   : > { %2258 = vmatmul.mubr.msk.bf16.vlgmr.msra.gmra.mrb[36].mxu1 %vm650_vm5, %v1453_v34  ;;  %v1562_v46 = vpop.permute.xlu0 %1561  ;;  %v2430_v34 = vld [vmem:[%s3244_s13 + $0x30] sm:$0xff]  }
 0xae0   : > { %2271 = vmatprep.mubr.msk.bf16.mxu1 %vm2822_vm3, %v2821_v8  ;;  %v1578_v49 = vsel %vm1577_vm0, %v1575_v48, %v1562_v46  ;;  %2268 = vmatpush3.bf16.msra.mxu1 %v2422_v7  ;;  %p2720_p8 = pnand %p2719_p9, %p2713_p1 }
 0xae1   : > { %2269 = vmatprep.subr.bf16.mxu1 %v2821_v8 }
 0xae2   : > { %v2463_v18 = vpop.eup %2462 }
 0xae3   : > { %v1452_v35 = vmul.f32 %v2463_v18, %v2459_v62  ;;  %v2431_v18 = vld [vmem:[%s3244_s13 + $0x38] sm:$0xff]  }
 0xae4   : > { %2270 = vmatpush3.bf16.msra.mxu1 %v2423_v9 }
 0xae5   : > { %v1454_v36 = vpack.c.bf16 %v1452_v35, %v1452_v35 }
 0xae7   : > { %2264 = vmatmul.mubr.msk.bf16.vlgmr.msra.gmra.mrb[24].mxu0 %vm650_vm5, %v1454_v36 }
 0xae8   : > { %2291 = vmatprep.mubr.msk.bf16.mxu0 %vm2822_vm3, %v2821_v8  ;;  %2276 = vmatpush3.bf16.msra.mxu0 %v2424_v12 }
 0xae9   : > { %2277 = vmatprep.subr.bf16.mxu0 %v2821_v8 }
 0xaec   : > { %2278 = vmatpush3.bf16.msra.mxu0 %v2425_v13 }
 0xaed   : > { %2279 = vmatprep.subr.bf16.mxu0 %v2821_v8 }
 0xaf0   : > { %2280 = vmatpush3.bf16.msra.mxu0 %v2426_v15 }
 0xaf1   : > { %2281 = vmatprep.subr.bf16.mxu0 %v2821_v8 }
 0xaf4   : > { %2282 = vmatpush3.bf16.msra.mxu0 %v2427_v16 }
 0xaf5   : > { %2283 = vmatprep.subr.bf16.mxu0 %v2821_v8 }
 0xaf8   : > { %2284 = vmatpush3.bf16.msra.mxu0 %v2428_v17 }
 0xaf9   : > { %2285 = vmatprep.subr.bf16.mxu0 %v2821_v8 }
 0xafc   : > { %2286 = vmatpush3.bf16.msra.mxu0 %v2429_v23 }
 0xafd   : > { %2287 = vmatprep.subr.bf16.mxu0 %v2821_v8 }
 0xb00   : > { %2288 = vmatpush3.bf16.msra.mxu0 %v2430_v34 }
 0xb01   : > { %2289 = vmatprep.subr.bf16.mxu0 %v2821_v8 }
 0xb04   : > { %2290 = vmatpush3.bf16.msra.mxu0 %v2431_v18 }
 0xbb2   : > { %v1497_v37 = vpop.f32.mrb[36].mxu1 }
 0xbb3   : > { %1569 = vrot.lane.b32.xlu0 %v1497_v37, %s2836_s29  ;;  %v2259_v38 = vpop.f32.mrb[37].mxu1 }
 0xbb4   : > { %v1500_v39 = vpop.f32.mrb[38].mxu1 }
 0xbb5   : > { %v2260_v40 = vpop.f32.mrb[39].mxu1 }
 0xbba   : > { %v1545_v41 = vpop.f32.mrb[24].mxu0 }
 0xbbb   : > { %1571 = vrot.lane.b32.xlu1 %v1545_v41, %s2836_s29  ;;  %v2265_v42 = vpop.f32.mrb[25].mxu0 }
 0xbbc   : > { %v1548_v43 = vpop.f32.mrb[26].mxu0 }
 0xbbd   : > { %v2266_v44 = vpop.f32.mrb[27].mxu0 }
 0xc25   : > { %v1570_v50 = vpop.permute.xlu0 %1569 }
 0xc26   : > { %v1581_v51 = vsel %vm1580_vm15, %v1578_v49, %v1570_v50 }
 0xc27   : > { %v1583_v52 = vadd.f32 %v1581_v51, %v3264_v10 }
 0xc29   : > { %v1585_v54 = vsel %vm599_vm4, %v1583_v52, 0.0 }
 0xc2a   : > { %1586 = vadd.xlane.f32.xlu0 %v1585_v54 }
 0xc2d   : > { %v1572_v57 = vpop.permute.xlu1 %1571 }
 0xc2e   : > { %v1582_v59 = vsel %vm1580_vm15, %v1579_v56, %v1572_v57 }
 0xc2f   : > { %v1584_v60 = vadd.f32 %v1582_v59, %v3266_v11 }
 0xc31   : > { %v1588_v2 = vsel %vm599_vm4, %v1584_v60, 0.0 }
 0xc32   : > { %1589 = vadd.xlane.f32.xlu1 %v1588_v2 }
 0xcb7   : > { %v1587_v61 = vpop.xlane.xlu0 %1586 }
 0xcb8   : > { %v1592_v63 = vmul.f32 0.03125, %v1587_v61 }
 0xcba   : > { %v1594_v10 = vsub.f32 %v1583_v52, %v1592_v63 }
 0xcbc   : > { %v1596_v0 = vmul.f32 %v1594_v10, %v1594_v10 }
 0xcbe   : > { %v1598_v1 = vsel %vm599_vm4, %v1596_v0, 0.0 }
 0xcbf   : > { %v1590_v3 = vpop.xlane.xlu1 %1589  ;;  %1599 = vadd.xlane.f32.xlu0 %v1598_v1 }
 0xcc0   : > { %v1593_v6 = vmul.f32 0.03125, %v1590_v3  ;;  %v2107_v3 = vld [vmem:[%s497_s9] ss:$0 sm:$0xff] }
 0xcc2   : > { %v1595_v4 = vsub.f32 %v1584_v60, %v1593_v6 }
 0xcc4   : > { %v1597_v5 = vmul.f32 %v1595_v4, %v1595_v4 }
 0xcc6   : > { %v1601_v11 = vsel %vm599_vm4, %v1597_v5, 0.0  ;;  %v2108_v5 = vld [vmem:[%s505_s10] ss:$0 sm:$0xff] }
 0xcc7   : > { %1602 = vadd.xlane.f32.xlu0 %v1601_v11 }
 0xd4c   : > { %v1600_v19 = vpop.xlane.xlu0 %1599 }
 0xd4d   : > { %v1604_v20 = vmul.f32 0.03125, %v1600_v19 }
 0xd4f   : > { %v1606_v21 = vadd.f32 1e-05, %v1604_v20 }
 0xd51   : > { %2464 = vrsqrt.f32 %v1606_v21 }
 0xd54   : > { %v1603_v22 = vpop.xlane.xlu0 %1602 }
 0xd55   : > { %v1605_v24 = vmul.f32 0.03125, %v1603_v22 }
 0xd57   : > { %v1607_v25 = vadd.f32 1e-05, %v1605_v24 }
 0xd59   : > { %2466 = vrsqrt.f32 %v1607_v25 }
 0xd5b   : > { %v2465_v14 = vpop.eup %2464 }
 0xd5c   : > { %v1610_v26 = vmul.f32 %v2465_v14, %v1594_v10 }
 0xd5e   : > { %v1619_v27 = vmul.f32 %v2094_v58, %v1610_v26 }
 0xd60   : > { %v1628_v31 = vadd.f32 %v2095_v29, %v1619_v27 }
 0xd63   : > { %v2467_v62 = vpop.eup %2466 }
 0xd64   : > { %v1611_v28 = vmul.f32 %v2467_v62, %v1595_v4 }
 0xd66   : > { %v1620_v30 = vmul.f32 %v2094_v58, %v1611_v28 }
 0xd68   : > { %v1629_v32 = vadd.f32 %v2095_v29, %v1620_v30 }
 0xd6a   : > { %v1630_v33 = vpack.c.bf16 %v1629_v32, %v1628_v31 }
 0xd6c   : > { %2272 = vmatmul.mubr.msk.bf16.vlgmr.msra.gmra.mrb[40].mxu1 %vm599_vm4, %v1630_v33 }
 0xe3f   : > { %v1684_v35 = vpop.f32.mrb[40].mxu1 }
 0xe40   : > { %v2273_v36 = vpop.f32.mrb[41].mxu1  ;;  %v1691_v38 = vmax.f32 %v1684_v35, 0.0 }
 0xe41   : > { %v1687_v37 = vpop.f32.mrb[42].mxu1 }
 0xe42   : > { %v1692_v39 = vmax.f32 %v1687_v37, 0.0  ;;  %v2274_v40 = vpop.f32.mrb[43].mxu1 }
 0xe44   : > { %v1693_v41 = vpack.c.bf16 %v1692_v39, %v1691_v38 }
 0xe46   : > { %2292 = vmatmul.mubr.bf16.vlgmr.msra.gmra.mrb[28].mxu0 %v1693_v41 }
 0xf19   : > { %v1792_v42 = vpop.f32.mrb[28].mxu0 }
 0xf1a   : > { %v1799_v43 = vadd.f32 %v1792_v42, %v1628_v31  ;;  %v2293_v44 = vpop.f32.mrb[29].mxu0 }
 0xf1b   : > { %v1795_v45 = vpop.f32.mrb[30].mxu0 }
 0xf1c   : > { %v1800_v46 = vadd.f32 %v1795_v45, %v1629_v32  ;;  %v2294_v47 = vpop.f32.mrb[31].mxu0  ;;  %v1801_v48 = vsel %vm599_vm4, %v1799_v43, 0.0 }
 0xf1d   : > { %1802 = vadd.xlane.f32.xlu1 %v1801_v48 }
 0xf1e   : > { %v1804_v8 = vsel %vm599_vm4, %v1800_v46, 0.0 }
 0xf1f   : > { %1805 = vadd.xlane.f32.xlu0 %v1804_v8 }
 0xfaa   : > { %v1803_v49 = vpop.xlane.xlu1 %1802 }
 0xfab   : > { %v1807_v50 = vmul.f32 0.03125, %v1803_v49 }
 0xfac   : > { %v1806_v51 = vpop.xlane.xlu0 %1805 }
 0xfad   : > { %v1809_v52 = vsub.f32 %v1799_v43, %v1807_v50  ;;  %v1808_v53 = vmul.f32 0.03125, %v1806_v51 }
 0xfaf   : > { %v1810_v54 = vsub.f32 %v1800_v46, %v1808_v53  ;;  %v1811_v55 = vmul.f32 %v1809_v52, %v1809_v52 }
 0xfb1   : > { %v1813_v56 = vsel %vm599_vm4, %v1811_v55, 0.0  ;;  %v1812_v57 = vmul.f32 %v1810_v54, %v1810_v54 }
 0xfb2   : > { %1814 = vadd.xlane.f32.xlu1 %v1813_v56 }
 0xfb3   : > { %v1816_v59 = vsel %vm599_vm4, %v1812_v57, 0.0 }
 0xfb4   : > { %1817 = vadd.xlane.f32.xlu0 %v1816_v59 }
0x103f   : > { %v1815_v60 = vpop.xlane.xlu1 %1814 }
0x1040   : > { %v1819_v2 = vmul.f32 0.03125, %v1815_v60 }
0x1041   : > { %v1818_v61 = vpop.xlane.xlu0 %1817 }
0x1042   : > { %v1821_v63 = vadd.f32 1e-05, %v1819_v2  ;;  %v1820_v10 = vmul.f32 0.03125, %v1818_v61 }
0x1044   : > { %2468 = vrsqrt.f32 %v1821_v63  ;;  %v1822_v0 = vadd.f32 1e-05, %v1820_v10 }
0x1046   : > { %2470 = vrsqrt.f32 %v1822_v0 }
0x104e   : > { %v2469_v1 = vpop.eup %2468 }
0x104f   : > { %v1825_v6 = vmul.f32 %v2469_v1, %v1809_v52 }
0x1050   : > { %v2471_v4 = vpop.eup %2470 }
0x1051   : > { %v1834_v11 = vmul.f32 %v2107_v3, %v1825_v6  ;;  %v1826_v7 = vmul.f32 %v2471_v4, %v1810_v54 }
0x1053   : > { %v1835_v9 = vmul.f32 %v2107_v3, %v1826_v7  ;;  %v1843_v12 = vadd.f32 %v2108_v5, %v1834_v11 }
0x1055   : > { %v1844_v13 = vadd.f32 %v2108_v5, %v1835_v9  ;;  %1845 = vst.msk [vmem:[#allocation17] sm:$0xff] %vm599_vm4, %v1843_v12 }
0x1057   : > { %1846 = vst.msk [vmem:[#allocation17 + $0x8] sm:$0xff] %vm599_vm4, %v1844_v13 }
0x1058   : > { %2723 = shalt.err (!%p2720_p8)
}
0x1059   : > { %s3578_s13 = sld [smem:[#allocation34_spill]] }
0x105f   : > { %s2724_s9 = scalar_lea.hbm %s3578_s13, 256 }
0x1060   : > { %p2725_p12 = scmp.ne.s32.totalorder %s3578_s13, %s2724_s9  ;;  %p2730_p0 = scmp.lt.u32.totalorder %s2724_s9, %s3578_s13 }
0x1062   : > { %p2726_p6 = pnand %p2725_p12, %p2346_p5 }
0x1064   : > { %p2727_p7 = pneg %p2726_p6 }
0x1066   : > { %p2732_p13 = pnand %p2730_p0, %p2727_p7 }
0x1068   : > { %2735 = shalt.err (!%p2732_p13)
}
0x1069   : > { %s2838_s26 = smov 128  }
0x106a   : > { %2314 = dma.vmem_to_hbm [thread:$0]  (%p2346_p5), %s1857_s16, 256, %s3578_s13, [#allocation5], %s2838_s26, %s2838_s26, %s2834_s21  }
0x106b   : > { %2781 = dma.done.wait (%p2346_p5), [#allocation5], 256  }
0x106c   : > { %2783 = vsyncadd (%p2346_p5), [#allocation5], 4294967040 }
0x106d PF: > { %s3579_s27 = sld [smem:[#allocation27_spill]]  ;;  %s3580_s23 = sld [smem:[#allocation24_spill]] }
0x106e   : > { %s3581_s29 = sld [smem:[#allocation29_spill]]  ;;  %s3582_s30 = sld [smem:[#allocation26_spill]] }
0x106f   : > { %s3583_s9 = sld [smem:[#allocation28_spill]] }
0x1073   : > { %s32_s10 = sadd.s32 1, %s3579_s27   ;;  %s3584_s27 = smov %s2790_s28 }
0x1074   : > { %p29_p10 = scmp.ge.s32.totalorder %s32_s10, 4   ;;  %s3585_s28 = smov %s3580_s23 }
0x1076   :  { %31 = sbr.rel (!%p29_p10) target bundleno = 17 (0x11), region = 172 }
0x107d   :  { %1872 = vsyncpa [#allocation4], 1 }
0x107e   :  { %1874 = vsyncpa [#allocation4 + $0x1], 1 }
0x107f   :  { %1875 = vsyncpa [#allocation7], 1 }
0x1080   :  { %1877 = vsyncpa [#allocation7 + $0x1], 1 }
0x1081   :  { %1878 = vsyncpa [#allocation10], 1 }
0x1082   :  { %1880 = vsyncpa [#allocation10 + $0x1], 1 }
0x1083   :  { %1881 = vsyncpa [#allocation13], 1 }
0x1084   :  { %1883 = vsyncpa [#allocation13 + $0x1], 1 }
0x1085   :  { %1884 = vsyncpa [#allocation16], 1 }
0x1086   :  { %1886 = vsyncpa [#allocation16 + $0x1], 1 }
0x1087   :  { %1887 = vsyncpa [#allocation5], 1 }
0x1088   :  { %1889 = vsyncpa [#allocation5 + $0x1], 1 }

</bundles_post_ra>
